<compile_context>
chip_gen: v6e
topology: v6e:2x2x1
jax: 0.10.0
libtpu: 0.0.40
codegen_flags: <defaults>
</compile_context>

<pallas_src>
import functools
import math

import jax
import jax.numpy as jnp
from jax.experimental import pallas as pl
from jax.experimental.pallas import tpu as pltpu


VMEM_BUDGET = 20 * 1024 * 1024   # conservative working-set budget per kernel step
VMEM_LIMIT = 32 * 1024 * 1024    # scoped VMEM limit (<= default on v6e/v7x, raises v5e)


def _round_up(x, m):
    return (x + m - 1) // m * m


def _pick_block(total, target, align):
    """Largest block <= target, multiple of `align`, preferring a divisor of total."""
    if total <= target:
        return _round_up(total, align)
    cap = (target // align) * align
    b = cap
    while b >= max(align, cap // 2):
        if total % b == 0:
            return b
        b -= align
    return cap


# ----------------------- single-pass fused linear (full-K block) -----------------------
# Computes  [LN(x)] @ w  (+ x2 @ w2)  + b  [+GELU]  [+residual]  in one grid pass
# (grid = (M tiles, N tiles)), bf16 operands into the MXU, f32 epilogue.

def _fused_linear_kernel(*refs, has_ln, has_x2, has_res, activation, eps):
    it = iter(refs)
    x_ref = next(it)
    if has_ln:
        g_ref = next(it)
        bln_ref = next(it)
    w_ref = next(it)
    if has_x2:
        x2_ref = next(it)
        w2_ref = next(it)
    b_ref = next(it)
    if has_res:
        res_ref = next(it)
    o_ref = next(it)

    x = x_ref[...]
    if has_ln:
        xf = x.astype(jnp.float32)
        mu = jnp.mean(xf, axis=-1, keepdims=True)
        var = jnp.mean(jnp.square(xf - mu), axis=-1, keepdims=True)
        xf = (xf - mu) * jax.lax.rsqrt(var + eps) * g_ref[...] + bln_ref[...]
        x = xf.astype(jnp.bfloat16)

    acc = jnp.dot(x, w_ref[...], preferred_element_type=jnp.float32)
    if has_x2:
        acc += jnp.dot(x2_ref[...], w2_ref[...], preferred_element_type=jnp.float32)
    acc += b_ref[...]
    if activation == "gelu":
        acc = jax.nn.gelu(acc)
    if has_res:
        acc += res_ref[...].astype(jnp.float32)
    o_ref[...] = acc.astype(o_ref.dtype)


# ----------------------- K-tiled fallback (huge K only) -----------------------

def _kgrid_linear_kernel(x_ref, w_ref, b_ref, *rest, activation, has_res):
    if has_res:
        res_ref, o_ref, acc_ref = rest
    else:
        res_ref = None
        o_ref, acc_ref = rest

    @pl.when(pl.program_id(2) == 0)
    def _():
        acc_ref[...] = jnp.zeros_like(acc_ref)

    acc_ref[...] += jnp.dot(x_ref[...], w_ref[...], preferred_element_type=jnp.float32)

    @pl.when(pl.program_id(2) == pl.num_programs(2) - 1)
    def _():
        y = acc_ref[...] + b_ref[...]
        if activation == "gelu":
            y = jax.nn.gelu(y)
        if has_res:
            y = y + res_ref[...].astype(jnp.float32)
        o_ref[...] = y.astype(o_ref.dtype)


def _kgrid_linear(x, w, b, *, residual, activation, out_dtype, tm=512, tn=512, tk=512):
    M, K = x.shape
    _, N = w.shape
    bm = tm if M >= tm else _round_up(M, 8)
    bn = tn if N >= tn else _round_up(N, 128)
    bk = tk if K >= tk else _round_up(K, 128)
    Mp, Np, Kp = _round_up(M, bm), _round_up(N, bn), _round_up(K, bk)

    xp = x.astype(jnp.bfloat16)
    wp = w.astype(jnp.bfloat16)
    if (Mp, Kp) != (M, K):
        xp = jnp.pad(xp, ((0, Mp - M), (0, Kp - K)))
    if (Kp, Np) != (K, N):
        wp = jnp.pad(wp, ((0, Kp - K), (0, Np - N)))
    bp = b.astype(jnp.float32).reshape(1, N)
    if Np != N:
        bp = jnp.pad(bp, ((0, 0), (0, Np - N)))

    args = [xp, wp, bp]
    in_specs = [pl.BlockSpec((bm, bk), lambda i, j, k: (i, k)),
                pl.BlockSpec((bk, bn), lambda i, j, k: (k, j)),
                pl.BlockSpec((1, bn), lambda i, j, k: (0, j))]
    has_res = residual is not None
    if has_res:
        rp = residual.astype(jnp.float32)
        if (Mp, Np) != (M, N):
            rp = jnp.pad(rp, ((0, Mp - M), (0, Np - N)))
        args.append(rp)
        in_specs.append(pl.BlockSpec((bm, bn), lambda i, j, k: (i, j)))

    out = pl.pallas_call(
        functools.partial(_kgrid_linear_kernel, activation=activation, has_res=has_res),
        out_shape=jax.ShapeDtypeStruct((Mp, Np), out_dtype),
        grid=(Mp // bm, Np // bn, Kp // bk),
        in_specs=in_specs,
        out_specs=pl.BlockSpec((bm, bn), lambda i, j, k: (i, j)),
        scratch_shapes=[pltpu.VMEM((bm, bn), jnp.float32)],
        compiler_params=pltpu.CompilerParams(
            dimension_semantics=("parallel", "parallel", "arbitrary"),
            vmem_limit_bytes=VMEM_LIMIT),
    )(*args)
    return out[:M, :N] if (Mp, Np) != (M, N) else out


def linear(x, w, b, *, x2=None, w2=None, ln=None, activation=None, residual=None,
           out_dtype=jnp.float32):
    """[LN(x)] @ w (+ x2 @ w2) + b, optional fused GELU and fused residual add."""
    M, K = x.shape
    _, N = w.shape
    K2 = 0 if x2 is None else x2.shape[1]
    out_bytes = jnp.dtype(out_dtype).itemsize
    x_bytes = 4 if ln is not None else 2

    def footprint(bm, bn):
        f = 2 * (bm * K * x_bytes + K * bn * 2 + bn * 4 + bm * bn * out_bytes)
        f += 2 * (bm * K2 * 2 + K2 * bn * 2)
        if residual is not None:
            f += 2 * bm * bn * 4
        f += bm * (K + K2) * 4 + 2 * bm * bn * 4      # in-kernel f32 temporaries
        return f

    bm = bn = None
    for bn_c in [N] + [v for v in (1024, 512, 256, 128) if v < N]:
        for bm_t in (512, 256, 128, 64, 32, 16, 8):
            bm_c = _pick_block(M, bm_t, 8)
            if footprint(bm_c, bn_c) <= VMEM_BUDGET:
                bm, bn = bm_c, bn_c
                break
        if bm is not None:
            break

    if bm is None:
        # Fallback: K-tiled accumulation; LN / second operand handled outside.
        if ln is not None:
            x = layernorm(x, ln[0], ln[1], out_dtype=jnp.bfloat16)
        if x2 is not None:
            x = jnp.concatenate([x.astype(jnp.bfloat16), x2.astype(jnp.bfloat16)], axis=1)
            w = jnp.concatenate([w, w2], axis=0)
        return _kgrid_linear(x, w, b, residual=residual, activation=activation,
                             out_dtype=out_dtype)

    Mp = _round_up(M, bm)
    Npad = _round_up(N, bn)

    xp = x.astype(jnp.float32) if ln is not None else x.astype(jnp.bfloat16)
    if Mp != M:
        xp = jnp.pad(xp, ((0, Mp - M), (0, 0)))
    wp = w.astype(jnp.bfloat16)
    bp = b.astype(jnp.float32).reshape(1, N)
    if Npad != N:
        wp = jnp.pad(wp, ((0, 0), (0, Npad - N)))
        bp = jnp.pad(bp, ((0, 0), (0, Npad - N)))

    args = [xp]
    in_specs = [pl.BlockSpec((bm, K), lambda i, j: (i, 0))]
    if ln is not None:
        g, bl = ln
        args += [g.astype(jnp.float32).reshape(1, K),
                 bl.astype(jnp.float32).reshape(1, K)]
        in_specs += [pl.BlockSpec((1, K), lambda i, j: (0, 0)),
                     pl.BlockSpec((1, K), lambda i, j: (0, 0))]
    args.append(wp)
    in_specs.append(pl.BlockSpec((K, bn), lambda i, j: (0, j)))
    if x2 is not None:
        x2p = x2.astype(jnp.bfloat16)
        w2p = w2.astype(jnp.bfloat16)
        if Mp != M:
            x2p = jnp.pad(x2p, ((0, Mp - M), (0, 0)))
        if Npad != N:
            w2p = jnp.pad(w2p, ((0, 0), (0, Npad - N)))
        args += [x2p, w2p]
        in_specs += [pl.BlockSpec((bm, K2), lambda i, j: (i, 0)),
                     pl.BlockSpec((K2, bn), lambda i, j: (0, j))]
    args.append(bp)
    in_specs.append(pl.BlockSpec((1, bn), lambda i, j: (0, j)))
    has_res = residual is not None
    if has_res:
        rp = residual.astype(jnp.float32)
        if Mp != M or Npad != N:
            rp = jnp.pad(rp, ((0, Mp - M), (0, Npad - N)))
        args.append(rp)
        in_specs.append(pl.BlockSpec((bm, bn), lambda i, j: (i, j)))

    out = pl.pallas_call(
        functools.partial(_fused_linear_kernel, has_ln=ln is not None,
                          has_x2=x2 is not None, has_res=has_res,
                          activation=activation, eps=1e-5),
        out_shape=jax.ShapeDtypeStruct((Mp, Npad), out_dtype),
        grid=(Mp // bm, Npad // bn),
        in_specs=in_specs,
        out_specs=pl.BlockSpec((bm, bn), lambda i, j: (i, j)),
        compiler_params=pltpu.CompilerParams(
            dimension_semantics=("parallel", "parallel"),
            vmem_limit_bytes=VMEM_LIMIT),
    )(*args)
    if Mp != M or Npad != N:
        out = out[:M, :N]
    return out


# ----------------------- standalone layernorm (fallback path only) -----------------------

def _layernorm_kernel(x_ref, g_ref, b_ref, o_ref, *, eps):
    x = x_ref[...].astype(jnp.float32)
    mu = jnp.mean(x, axis=-1, keepdims=True)
    var = jnp.mean(jnp.square(x - mu), axis=-1, keepdims=True)
    y = (x - mu) * jax.lax.rsqrt(var + eps)
    o_ref[...] = (y * g_ref[...] + b_ref[...]).astype(o_ref.dtype)


def layernorm(x, g, b, *, eps=1e-5, out_dtype=jnp.bfloat16, tm=512):
    M, D = x.shape
    bm = _pick_block(M, tm, 8)
    Mp = _round_up(M, bm)
    xp = jnp.pad(x, ((0, Mp - M), (0, 0))) if Mp != M else x
    out = pl.pallas_call(
        functools.partial(_layernorm_kernel, eps=eps),
        out_shape=jax.ShapeDtypeStruct((Mp, D), out_dtype),
        grid=(Mp // bm,),
        in_specs=[pl.BlockSpec((bm, D), lambda i: (i, 0)),
                  pl.BlockSpec((1, D), lambda i: (0, 0)),
                  pl.BlockSpec((1, D), lambda i: (0, 0))],
        out_specs=pl.BlockSpec((bm, D), lambda i: (i, 0)),
        compiler_params=pltpu.CompilerParams(
            dimension_semantics=("parallel",), vmem_limit_bytes=VMEM_LIMIT),
    )(xp, g.reshape(1, D), b.reshape(1, D))
    return out[:M] if Mp != M else out


# -------------------- group-batched multi-head attention kernel --------------------

def _mha_kernel(q_ref, k_ref, v_ref, o_ref, *, nheads, dh, scale):
    for h in range(nheads):                       # static unroll over heads in the block
        sl = slice(h * dh, (h + 1) * dh)
        q = q_ref[:, :, sl] * scale               # bf16, scale folded into q (S*dh work)
        k = k_ref[:, :, sl]                        # bf16
        v = v_ref[:, :, sl]                        # bf16
        s = jax.lax.dot_general(q, k, (((2,), (2,)), ((0,), (0,))),
                                preferred_element_type=jnp.float32)
        s = s - jnp.max(s, axis=-1, keepdims=True)
        p = jnp.exp(s)                             # f32 softmax numerator
        l = jnp.sum(p, axis=-1, keepdims=True)
        o = jax.lax.dot_general(p.astype(jnp.bfloat16), v,
                                (((2,), (1,)), ((0,), (0,))),
                                preferred_element_type=jnp.float32)
        o = o * pl.reciprocal(l, approx=True)      # normalize the (gb,S,dh) output
        o_ref[:, :, sl] = o.astype(o_ref.dtype)    # direct per-head store, no concat


def mha(q, k, v, nheads, dh, *, out_dtype=jnp.bfloat16):
    """q/k/v: (G, S, nheads*dh) bf16. Per-group, per-head softmax(QK^T/sqrt(dh)) V."""
    G, S, C = q.shape
    scale = 1.0 / math.sqrt(dh)

    # VMEM budget: q/k/v/out double-buffered (bf16) + f32 scores + bf16 probs + temps.
    per_group = (2 * 4 * S * C * 2
                 + S * S * 4 + S * S * 2
                 + 3 * S * dh * 4)
    gb = max(1, min(G, VMEM_BUDGET // max(per_group, 1)))
    if G >= 2:
        gb = min(gb, -(-G // 2))                  # keep >= 2 grid steps (v7x megacore)
    d = gb                                        # prefer a divisor of G (no padding)
    while d > 1 and G % d:
        d -= 1
    if d >= max(1, gb // 2):
        gb, Gp = d, G
    else:
        Gp = _round_up(G, gb)

    qp, kp, vp = (a.astype(jnp.bfloat16) for a in (q, k, v))
    if Gp != G:
        pad = ((0, Gp - G), (0, 0), (0, 0))
        qp, kp, vp = jnp.pad(qp, pad), jnp.pad(kp, pad), jnp.pad(vp, pad)

    spec = pl.BlockSpec((gb, S, C), lambda g: (g, 0, 0))
    out = pl.pallas_call(
        functools.partial(_mha_kernel, nheads=nheads, dh=dh, scale=scale),
        out_shape=jax.ShapeDtypeStruct((Gp, S, C), out_dtype),
        grid=(Gp // gb,),
        in_specs=[spec, spec, spec],
        out_specs=spec,
        compiler_params=pltpu.CompilerParams(
            dimension_semantics=("parallel",), vmem_limit_bytes=VMEM_LIMIT),
    )(qp, kp, vp)
    return out[:G] if Gp != G else out


# --------------- fused final LayerNorm + token-mean + classifier head ---------------

def _pool_head_kernel(x_ref, g_ref, bln_ref, w_ref, b_ref, o_ref, acc_ref,
                      *, eps, inv_n, n_valid, bt, mask_needed):
    t = pl.program_id(0)

    @pl.when(t == 0)
    def _():
        acc_ref[...] = jnp.zeros_like(acc_ref)

    x = x_ref[...].astype(jnp.float32)            # (B, bt, D)
    mu = jnp.mean(x, axis=-1, keepdims=True)
    var = jnp.mean(jnp.square(x - mu), axis=-1, keepdims=True)
    y = (x - mu) * jax.lax.rsqrt(var + eps) * g_ref[...] + bln_ref[...]
    if mask_needed:
        tok = jax.lax.broadcasted_iota(jnp.int32, (1, bt, 1), 1) + t * bt
        y = jnp.where(tok < n_valid, y, 0.0)
    acc_ref[...] += jnp.sum(y, axis=1)            # (B, D) running sum over tokens

    @pl.when(t == pl.num_programs(0) - 1)
    def _():
        pooled = (acc_ref[...] * inv_n).astype(jnp.bfloat16)
        o_ref[...] = (jnp.dot(pooled, w_ref[...], preferred_element_type=jnp.float32)
                      + b_ref[...]).astype(o_ref.dtype)


def pool_head(x, g, bln, w, b, *, eps=1e-5, tok_tile=512):
    """x: (B, N, D) -> LayerNorm -> mean over tokens -> classifier -> (B, num_classes)."""
    B, N, D = x.shape
    _, C = w.shape
    bt = _pick_block(N, tok_tile, 8)
    Np = _round_up(N, bt)
    mask_needed = Np != N
    xp = jnp.pad(x, ((0, 0), (0, Np - N), (0, 0))) if mask_needed else x
    return pl.pallas_call(
        functools.partial(_pool_head_kernel, eps=eps, inv_n=1.0 / N, n_valid=N,
                          bt=bt, mask_needed=mask_needed),
        out_shape=jax.ShapeDtypeStruct((B, C), jnp.float32),
        grid=(Np // bt,),
        in_specs=[pl.BlockSpec((B, bt, D), lambda i: (0, i, 0)),
                  pl.BlockSpec((1, D), lambda i: (0, 0)),
                  pl.BlockSpec((1, D), lambda i: (0, 0)),
                  pl.BlockSpec((D, C), lambda i: (0, 0)),
                  pl.BlockSpec((1, C), lambda i: (0, 0))],
        out_specs=pl.BlockSpec((B, C), lambda i: (0, 0)),
        scratch_shapes=[pltpu.VMEM((B, D), jnp.float32)],
        compiler_params=pltpu.CompilerParams(
            dimension_semantics=("arbitrary",), vmem_limit_bytes=VMEM_LIMIT),
    )(xp, g.astype(jnp.float32).reshape(1, D), bln.astype(jnp.float32).reshape(1, D),
      w.astype(jnp.bfloat16), b.astype(jnp.float32).reshape(1, C))


# ----------------------------- Model -----------------------------

def init_params(key, cfg):
    C, D = cfg["in_channels"], cfg["embed_dim"]
    ps, ts = cfg["patch_size"], cfg["tubelet_size"]
    mlp, L = cfg["mlp_dim"], cfg["num_layers"]
    ncls = cfg["num_classes"]
    T_eff = cfg["num_frames"] // ts
    npatch = (cfg["img_size"] // ps) ** 2
    ntok = T_eff * npatch
    K = C * ts * ps * ps

    keys = jax.random.split(key, 3 + L)

    def nrm(k, shape, s=0.02):
        # Matmul weights live in bf16 at rest (MXU-native); everything else stays f32.
        return (jax.random.normal(k, shape, jnp.float32) * s).astype(jnp.bfloat16)

    params = {
        # Conv3d(in, D, kernel=(ts,ps,ps), stride=(ts,ps,ps)) flattened as a matmul;
        # patch flattening order (C, ts, ps, ps) matches the Conv3d weight reshape.
        "embed_w": nrm(keys[0], (K, D)),
        "embed_b": jnp.zeros((D,), jnp.float32),
        "pos": jax.random.normal(keys[1], (1, ntok, D), jnp.float32),
        "norm_g": jnp.ones((D,), jnp.float32),
        "norm_b": jnp.zeros((D,), jnp.float32),
        "head_w": nrm(keys[2], (D, ncls)),
        "head_b": jnp.zeros((ncls,), jnp.float32),
        "layers": [],
    }
    for l in range(L):
        lk = jax.random.split(keys[3 + l], 4)
        params["layers"].append({
            "ln1_g": jnp.ones((D,), jnp.float32), "ln1_b": jnp.zeros((D,), jnp.float32),
            "qkv_w": nrm(lk[0], (D, 3 * D)), "qkv_b": jnp.zeros((3 * D,), jnp.float32),
            "proj_w": nrm(lk[1], (D, D)),   "proj_b": jnp.zeros((D,), jnp.float32),
            "ln2_g": jnp.ones((D,), jnp.float32), "ln2_b": jnp.zeros((D,), jnp.float32),
            "fc1_w": nrm(lk[2], (D, mlp)),  "fc1_b": jnp.zeros((mlp,), jnp.float32),
            "fc2_w": nrm(lk[3], (mlp, D)),  "fc2_b": jnp.zeros((D,), jnp.float32),
        })
    return params


def vivit_forward(params, x, cfg):
    # layout: x is NCTHW (B, C, T, H, W) float32, same as the PyTorch module input.
    B, C, T, H, W = x.shape
    ps, ts = cfg["patch_size"], cfg["tubelet_size"]
    D = cfg["embed_dim"]
    nh = cfg["num_heads"]
    dh = D // nh
    T_eff, Hp, Wp = T // ts, H // ps, W // ps
    npatch = Hp * Wp
    N = T_eff * npatch

    # --- Tubelet embedding: non-overlapping Conv3d == patchify + fused matmul ---
    p = x.reshape(B, C, T_eff, ts, Hp, ps, Wp, ps)
    p = p.transpose(0, 2, 4, 6, 1, 3, 5, 7)            # (B, T', Hp, Wp, C, ts, ps, ps)
    p = p.reshape(B * N, C * ts * ps * ps)
    pos2d = jnp.broadcast_to(params["pos"], (B, N, D)).reshape(B * N, D)
    # positional embedding fused as the linear's residual input
    xt = linear(p, params["embed_w"], params["embed_b"],
                residual=pos2d, out_dtype=jnp.float32)                # (B*N, D) f32

    hs = nh // 2          # spatial heads
    ht = nh - hs          # temporal heads

    for lyr in params["layers"]:
        # --- Factorized dot-product attention (pre-norm; LN fused into qkv matmul) ---
        qkv = linear(xt, lyr["qkv_w"], lyr["qkv_b"],
                     ln=(lyr["ln1_g"], lyr["ln1_b"]), out_dtype=jnp.bfloat16)
        qkv = qkv.reshape(B, N, 3, nh, dh)
        q, k, v = qkv[:, :, 0], qkv[:, :, 1], qkv[:, :, 2]            # (B, N, nh, dh)

        # spatial heads: attend over patches within a frame (pure reshape, no transpose)
        def to_sp(a):
            return a[:, :, :hs, :].reshape(B * T_eff, npatch, hs * dh)

        # temporal heads: attend over frames at each spatial location (one axis swap)
        def to_tp(a):
            a = a[:, :, hs:, :].reshape(B, T_eff, npatch, ht * dh)
            return a.transpose(0, 2, 1, 3).reshape(B * npatch, T_eff, ht * dh)

        o_s = mha(to_sp(q), to_sp(k), to_sp(v), hs, dh).reshape(B * N, hs * dh)

        o_t = mha(to_tp(q), to_tp(k), to_tp(v), ht, dh)
        o_t = o_t.reshape(B, npatch, T_eff, ht * dh).transpose(0, 2, 1, 3)
        o_t = o_t.reshape(B * N, ht * dh)

        # output projection: row-split weight avoids the host-side head concat;
        # residual add fused in the same kernel.
        xt = linear(o_s, lyr["proj_w"][: hs * dh], lyr["proj_b"],
                    x2=o_t, w2=lyr["proj_w"][hs * dh:],
                    residual=xt, out_dtype=jnp.float32)

        # --- MLP block (LN2 + fc1 + GELU fused, fc2 + residual fused) ---
        h1 = linear(xt, lyr["fc1_w"], lyr["fc1_b"],
                    ln=(lyr["ln2_g"], lyr["ln2_b"]),
                    activation="gelu", out_dtype=jnp.bfloat16)
        xt = linear(h1, lyr["fc2_w"], lyr["fc2_b"],
                    residual=xt, out_dtype=jnp.float32)

    # --- Fused final LayerNorm + token-mean + classification head ---
    logits = pool_head(xt.reshape(B, N, D), params["norm_g"], params["norm_b"],
                       params["head_w"], params["head_b"])
    return logits


# ----------------------------- Demo -----------------------------

if __name__ == "__main__":
    cfg = dict(in_channels=3, embed_dim=32, patch_size=8, tubelet_size=2,
               num_heads=4, mlp_dim=64, num_layers=2, num_classes=10,
               num_frames=4, img_size=16, dropout=0.1)

    key = jax.random.PRNGKey(0)
    kp, kx = jax.random.split(key)
    params = init_params(kp, cfg)

    B = 2
    x = jax.random.normal(
        kx, (B, cfg["in_channels"], cfg["num_frames"], cfg["img_size"], cfg["img_size"]),
        dtype=jnp.float32)

    fwd = jax.jit(lambda p, xx: vivit_forward(p, xx, cfg))
    out = fwd(params, x)
    jax.block_until_ready(out)

    assert out.shape == (B, cfg["num_classes"])
    assert jnp.all(jnp.isfinite(out))
    print("KERNEL_OK")
</pallas_src>

<mosaic_0001>
module attributes {stable_mosaic.version = 11 : i64} {
  func.func @_fused_linear_kernel(%arg0: i32, %arg1: i32, %arg2: memref<16x384xbf16, #tpu.memory_space<vmem>>, %arg3: memref<384x32xbf16, #tpu.memory_space<vmem>>, %arg4: memref<1x32xf32, #tpu.memory_space<vmem>>, %arg5: memref<16x32xf32, #tpu.memory_space<vmem>>, %arg6: memref<16x32xf32, #tpu.memory_space<vmem>>) attributes {dimension_semantics = [#tpu.dimension_semantics<parallel>, #tpu.dimension_semantics<parallel>], iteration_bounds = array<i64: 1, 1>, scalar_prefetch = 0 : i64, scratch_operands = 0 : i64, tpu.core_type = #tpu.core_type<tc>, window_params = [{transform_indices = @transform_0, window_bounds = array<i64: 16, 384>}, {transform_indices = @transform_1, window_bounds = array<i64: 384, 32>}, {transform_indices = @transform_2, window_bounds = array<i64: 1, 32>}, {transform_indices = @transform_3, window_bounds = array<i64: 16, 32>}, {transform_indices = @transform_4, window_bounds = array<i64: 16, 32>}]} {
    %c0 = arith.constant 0 : index
    %c0_0 = arith.constant 0 : index
    %0 = vector.load %arg2[%c0, %c0_0] : memref<16x384xbf16, #tpu.memory_space<vmem>>, vector<16x384xbf16>
    %c0_1 = arith.constant 0 : index
    %c0_2 = arith.constant 0 : index
    %1 = vector.load %arg3[%c0_1, %c0_2] : memref<384x32xbf16, #tpu.memory_space<vmem>>, vector<384x32xbf16>
    %cst = arith.constant dense<0.000000e+00> : vector<16x32xf32>
    %2 = tpu.matmul %0, %1, %cst {dimension_numbers = #tpu.dot_dimension_numbers<[1], [0], [0], [1], [0, 0, 1, 1], [], []>} : vector<16x384xbf16>, vector<384x32xbf16>, vector<16x32xf32> -> vector<16x32xf32>
    %c0_3 = arith.constant 0 : index
    %c0_4 = arith.constant 0 : index
    %3 = vector.load %arg4[%c0_3, %c0_4] : memref<1x32xf32, #tpu.memory_space<vmem>>, vector<1x32xf32>
    %4 = vector.broadcast %3 : vector<1x32xf32> to vector<16x32xf32>
    %5 = arith.addf %2, %4 : vector<16x32xf32>
    %c0_5 = arith.constant 0 : index
    %c0_6 = arith.constant 0 : index
    %6 = vector.load %arg5[%c0_5, %c0_6] : memref<16x32xf32, #tpu.memory_space<vmem>>, vector<16x32xf32>
    %7 = arith.addf %5, %6 : vector<16x32xf32>
    %c0_7 = arith.constant 0 : index
    %c0_8 = arith.constant 0 : index
    %8 = vector.load %arg6[%c0_7, %c0_8] : memref<16x32xf32, #tpu.memory_space<vmem>>, vector<16x32xf32>
    tpu.vector_store %arg6[%c0_7, %c0_8], %7 {strides = array<i32>} : memref<16x32xf32, #tpu.memory_space<vmem>>, vector<16x32xf32>,
    return
  }
  func.func @transform_0(%arg0: i32, %arg1: i32) -> (i32, i32) {
    %c0_i32 = arith.constant 0 : i32
    %c0_i32_0 = arith.constant 0 : i32
    return %arg0, %c0_i32 : i32, i32
  }
  func.func @transform_1(%arg0: i32, %arg1: i32) -> (i32, i32) {
    %c0_i32 = arith.constant 0 : i32
    %c0_i32_0 = arith.constant 0 : i32
    return %c0_i32, %arg1 : i32, i32
  }
  func.func @transform_2(%arg0: i32, %arg1: i32) -> (i32, i32) {
    %c0_i32 = arith.constant 0 : i32
    %c0_i32_0 = arith.constant 0 : i32
    return %c0_i32, %arg1 : i32, i32
  }
  func.func @transform_3(%arg0: i32, %arg1: i32) -> (i32, i32) {
    %c0_i32 = arith.constant 0 : i32
    return %arg0, %arg1 : i32, i32
  }
  func.func @transform_4(%arg0: i32, %arg1: i32) -> (i32, i32) {
    %c0_i32 = arith.constant 0 : i32
    return %arg0, %arg1 : i32, i32
  }
}

module attributes {stable_mosaic.version = 11 : i64} {
  func.func @_fused_linear_kernel(%arg0: i32, %arg1: i32, %arg2: memref<16x32xf32, #tpu.memory_space<vmem>>, %arg3: memref<1x32xf32, #tpu.memory_space<vmem>>, %arg4: memref<1x32xf32, #tpu.memory_space<vmem>>, %arg5: memref<32x96xbf16, #tpu.memory_space<vmem>>, %arg6: memref<1x96xf32, #tpu.memory_space<vmem>>, %arg7: memref<16x96xbf16, #tpu.memory_space<vmem>>) attributes {dimension_semantics = [#tpu.dimension_semantics<parallel>, #tpu.dimension_semantics<parallel>], iteration_bounds = array<i64: 1, 1>, scalar_prefetch = 0 : i64, scratch_operands = 0 : i64, tpu.core_type = #tpu.core_type<tc>, window_params = [{transform_indices = @transform_0, window_bounds = array<i64: 16, 32>}, {pipeline_mode = #tpu.pipeline_mode<synchronous>, transform_indices = @transform_1, window_bounds = array<i64: 1, 32>}, {pipeline_mode = #tpu.pipeline_mode<synchronous>, transform_indices = @transform_2, window_bounds = array<i64: 1, 32>}, {transform_indices = @transform_3, window_bounds = array<i64: 32, 96>}, {transform_indices = @transform_4, window_bounds = array<i64: 1, 96>}, {transform_indices = @transform_5, window_bounds = array<i64: 16, 96>}]} {
    %c0 = arith.constant 0 : index
    %c0_0 = arith.constant 0 : index
    %0 = vector.load %arg2[%c0, %c0_0] : memref<16x32xf32, #tpu.memory_space<vmem>>, vector<16x32xf32>
    %cst = arith.constant dense<0.000000e+00> : vector<16xf32>
    %1 = vector.multi_reduction <add>, %0, %cst [1] : vector<16x32xf32> to vector<16xf32>
    %2 = vector.shape_cast %1 : vector<16xf32> to vector<16x1xf32>
    %cst_1 = arith.constant 3.200000e+01 : f32
    %3 = vector.broadcast %cst_1 : f32 to vector<16x1xf32>
    %4 = arith.divf %2, %3 : vector<16x1xf32>
    %5 = vector.broadcast %4 : vector<16x1xf32> to vector<16x32xf32>
    %6 = arith.subf %0, %5 : vector<16x32xf32>
    %7 = arith.mulf %6, %6 : vector<16x32xf32>
    %cst_2 = arith.constant dense<0.000000e+00> : vector<16xf32>
    %8 = vector.multi_reduction <add>, %7, %cst_2 [1] : vector<16x32xf32> to vector<16xf32>
    %9 = vector.shape_cast %8 : vector<16xf32> to vector<16x1xf32>
    %cst_3 = arith.constant 3.200000e+01 : f32
    %10 = vector.broadcast %cst_3 : f32 to vector<16x1xf32>
    %11 = arith.divf %9, %10 : vector<16x1xf32>
    %12 = vector.broadcast %4 : vector<16x1xf32> to vector<16x32xf32>
    %13 = arith.subf %0, %12 : vector<16x32xf32>
    %cst_4 = arith.constant 9.99999974E-6 : f32
    %14 = vector.broadcast %cst_4 : f32 to vector<16x1xf32>
    %15 = arith.addf %11, %14 : vector<16x1xf32>
    %16 = math.rsqrt %15 : vector<16x1xf32>
    %17 = vector.broadcast %16 : vector<16x1xf32> to vector<16x32xf32>
    %18 = arith.mulf %13, %17 : vector<16x32xf32>
    %c0_5 = arith.constant 0 : index
    %c0_6 = arith.constant 0 : index
    %19 = vector.load %arg3[%c0_5, %c0_6] : memref<1x32xf32, #tpu.memory_space<vmem>>, vector<1x32xf32>
    %20 = vector.broadcast %19 : vector<1x32xf32> to vector<16x32xf32>
    %21 = arith.mulf %18, %20 : vector<16x32xf32>
    %c0_7 = arith.constant 0 : index
    %c0_8 = arith.constant 0 : index
    %22 = vector.load %arg4[%c0_7, %c0_8] : memref<1x32xf32, #tpu.memory_space<vmem>>, vector<1x32xf32>
    %23 = vector.broadcast %22 : vector<1x32xf32> to vector<16x32xf32>
    %24 = arith.addf %21, %23 : vector<16x32xf32>
    %25 = arith.truncf %24 : vector<16x32xf32> to vector<16x32xbf16>
    %c0_9 = arith.constant 0 : index
    %c0_10 = arith.constant 0 : index
    %26 = vector.load %arg5[%c0_9, %c0_10] : memref<32x96xbf16, #tpu.memory_space<vmem>>, vector<32x96xbf16>
    %cst_11 = arith.constant dense<0.000000e+00> : vector<16x96xf32>
    %27 = tpu.matmul %25, %26, %cst_11 {dimension_numbers = #tpu.dot_dimension_numbers<[1], [0], [0], [1], [0, 0, 1, 1], [], []>} : vector<16x32xbf16>, vector<32x96xbf16>, vector<16x96xf32> -> vector<16x96xf32>
    %c0_12 = arith.constant 0 : index
    %c0_13 = arith.constant 0 : index
    %28 = vector.load %arg6[%c0_12, %c0_13] : memref<1x96xf32, #tpu.memory_space<vmem>>, vector<1x96xf32>
    %29 = vector.broadcast %28 : vector<1x96xf32> to vector<16x96xf32>
    %30 = arith.addf %27, %29 : vector<16x96xf32>
    %31 = arith.truncf %30 : vector<16x96xf32> to vector<16x96xbf16>
    %c0_14 = arith.constant 0 : index
    %c0_15 = arith.constant 0 : index
    %32 = vector.load %arg7[%c0_14, %c0_15] : memref<16x96xbf16, #tpu.memory_space<vmem>>, vector<16x96xbf16>
    tpu.vector_store %arg7[%c0_14, %c0_15], %31 {strides = array<i32>} : memref<16x96xbf16, #tpu.memory_space<vmem>>, vector<16x96xbf16>,
    return
  }
  func.func @transform_0(%arg0: i32, %arg1: i32) -> (i32, i32) {
    %c0_i32 = arith.constant 0 : i32
    %c0_i32_0 = arith.constant 0 : i32
    return %arg0, %c0_i32 : i32, i32
  }
  func.func @transform_1(%arg0: i32, %arg1: i32) -> (i32, i32) {
    %c0_i32 = arith.constant 0 : i32
    %c0_i32_0 = arith.constant 0 : i32
    %c0_i32_1 = arith.constant 0 : i32
    return %c0_i32, %c0_i32_0 : i32, i32
  }
  func.func @transform_2(%arg0: i32, %arg1: i32) -> (i32, i32) {
    %c0_i32 = arith.constant 0 : i32
    %c0_i32_0 = arith.constant 0 : i32
    %c0_i32_1 = arith.constant 0 : i32
    return %c0_i32, %c0_i32_0 : i32, i32
  }
  func.func @transform_3(%arg0: i32, %arg1: i32) -> (i32, i32) {
    %c0_i32 = arith.constant 0 : i32
    %c0_i32_0 = arith.constant 0 : i32
    return %c0_i32, %arg1 : i32, i32
  }
  func.func @transform_4(%arg0: i32, %arg1: i32) -> (i32, i32) {
    %c0_i32 = arith.constant 0 : i32
    %c0_i32_0 = arith.constant 0 : i32
    return %c0_i32, %arg1 : i32, i32
  }
  func.func @transform_5(%arg0: i32, %arg1: i32) -> (i32, i32) {
    %c0_i32 = arith.constant 0 : i32
    return %arg0, %arg1 : i32, i32
  }
}

module attributes {stable_mosaic.version = 11 : i64} {
  func.func @_mha_kernel(%arg0: i32, %arg1: memref<4x2x16xbf16, #tpu.memory_space<vmem>>, %arg2: memref<4x2x16xbf16, #tpu.memory_space<vmem>>, %arg3: memref<4x2x16xbf16, #tpu.memory_space<vmem>>, %arg4: memref<4x2x16xbf16, #tpu.memory_space<vmem>>) attributes {dimension_semantics = [#tpu.dimension_semantics<parallel>], iteration_bounds = array<i64: 2>, scalar_prefetch = 0 : i64, scratch_operands = 0 : i64, tpu.core_type = #tpu.core_type<tc>, window_params = [{transform_indices = @transform_0, window_bounds = array<i64: 4, 2, 16>}, {transform_indices = @transform_1, window_bounds = array<i64: 4, 2, 16>}, {transform_indices = @transform_2, window_bounds = array<i64: 4, 2, 16>}, {transform_indices = @transform_3, window_bounds = array<i64: 4, 2, 16>}]} {
    %c0 = arith.constant 0 : index
    %c0_0 = arith.constant 0 : index
    %c0_1 = arith.constant 0 : index
    %0 = vector.load %arg1[%c0, %c0_0, %c0_1] : memref<4x2x16xbf16, #tpu.memory_space<vmem>>, vector<4x2x8xbf16>
    %cst = arith.constant 3.535160e-01 : bf16
    %1 = vector.broadcast %cst : bf16 to vector<4x2x8xbf16>
    %2 = arith.mulf %0, %1 : vector<4x2x8xbf16>
    %c0_2 = arith.constant 0 : index
    %c0_3 = arith.constant 0 : index
    %c0_4 = arith.constant 0 : index
    %3 = vector.load %arg2[%c0_2, %c0_3, %c0_4] : memref<4x2x16xbf16, #tpu.memory_space<vmem>>, vector<4x2x8xbf16>
    %c0_5 = arith.constant 0 : index
    %c0_6 = arith.constant 0 : index
    %c0_7 = arith.constant 0 : index
    %4 = vector.load %arg3[%c0_5, %c0_6, %c0_7] : memref<4x2x16xbf16, #tpu.memory_space<vmem>>, vector<4x2x8xbf16>
    %cst_8 = arith.constant dense<0.000000e+00> : vector<4x2x2xf32>
    %5 = tpu.matmul %2, %3, %cst_8 {dimension_numbers = #tpu.dot_dimension_numbers<[2], [2], [1], [1], [0, 0, 0, 1, 1, 1], [0], [0]>} : vector<4x2x8xbf16>, vector<4x2x8xbf16>, vector<4x2x2xf32> -> vector<4x2x2xf32>
    %cst_9 = arith.constant dense<0xFF800000> : vector<4x2xf32>
    %6 = vector.multi_reduction <maximumf>, %5, %cst_9 [2] : vector<4x2x2xf32> to vector<4x2xf32>
    %7 = vector.shape_cast %6 : vector<4x2xf32> to vector<4x2x1xf32>
    %8 = vector.broadcast %7 : vector<4x2x1xf32> to vector<4x2x2xf32>
    %9 = arith.subf %5, %8 : vector<4x2x2xf32>
    %10 = math.exp %9 : vector<4x2x2xf32>
    %cst_10 = arith.constant dense<0.000000e+00> : vector<4x2xf32>
    %11 = vector.multi_reduction <add>, %10, %cst_10 [2] : vector<4x2x2xf32> to vector<4x2xf32>
    %12 = vector.shape_cast %11 : vector<4x2xf32> to vector<4x2x1xf32>
    %13 = arith.truncf %10 : vector<4x2x2xf32> to vector<4x2x2xbf16>
    %cst_11 = arith.constant dense<0.000000e+00> : vector<4x2x8xf32>
    %14 = tpu.matmul %13, %4, %cst_11 {dimension_numbers = #tpu.dot_dimension_numbers<[2], [1], [1], [2], [0, 0, 0, 1, 1, 2], [0], [0]>} : vector<4x2x2xbf16>, vector<4x2x8xbf16>, vector<4x2x8xf32> -> vector<4x2x8xf32>
    %15 = tpu.reciprocal %12 {approx = true} : vector<4x2x1xf32> -> vector<4x2x1xf32>
    %16 = vector.broadcast %15 : vector<4x2x1xf32> to vector<4x2x8xf32>
    %17 = arith.mulf %14, %16 : vector<4x2x8xf32>
    %18 = arith.truncf %17 : vector<4x2x8xf32> to vector<4x2x8xbf16>
    %c0_12 = arith.constant 0 : index
    %c0_13 = arith.constant 0 : index
    %c0_14 = arith.constant 0 : index
    %19 = vector.load %arg4[%c0_12, %c0_13, %c0_14] : memref<4x2x16xbf16, #tpu.memory_space<vmem>>, vector<4x2x8xbf16>
    tpu.vector_store %arg4[%c0_12, %c0_13, %c0_14], %18 {strides = array<i32>} : memref<4x2x16xbf16, #tpu.memory_space<vmem>>, vector<4x2x8xbf16>,
    %c0_15 = arith.constant 0 : index
    %c0_16 = arith.constant 0 : index
    %c8 = arith.constant 8 : index
    %20 = vector.load %arg1[%c0_15, %c0_16, %c8] : memref<4x2x16xbf16, #tpu.memory_space<vmem>>, vector<4x2x8xbf16>
    %cst_17 = arith.constant 3.535160e-01 : bf16
    %21 = vector.broadcast %cst_17 : bf16 to vector<4x2x8xbf16>
    %22 = arith.mulf %20, %21 : vector<4x2x8xbf16>
    %c0_18 = arith.constant 0 : index
    %c0_19 = arith.constant 0 : index
    %c8_20 = arith.constant 8 : index
    %23 = vector.load %arg2[%c0_18, %c0_19, %c8_20] : memref<4x2x16xbf16, #tpu.memory_space<vmem>>, vector<4x2x8xbf16>
    %c0_21 = arith.constant 0 : index
    %c0_22 = arith.constant 0 : index
    %c8_23 = arith.constant 8 : index
    %24 = vector.load %arg3[%c0_21, %c0_22, %c8_23] : memref<4x2x16xbf16, #tpu.memory_space<vmem>>, vector<4x2x8xbf16>
    %cst_24 = arith.constant dense<0.000000e+00> : vector<4x2x2xf32>
    %25 = tpu.matmul %22, %23, %cst_24 {dimension_numbers = #tpu.dot_dimension_numbers<[2], [2], [1], [1], [0, 0, 0, 1, 1, 1], [0], [0]>} : vector<4x2x8xbf16>, vector<4x2x8xbf16>, vector<4x2x2xf32> -> vector<4x2x2xf32>
    %cst_25 = arith.constant dense<0xFF800000> : vector<4x2xf32>
    %26 = vector.multi_reduction <maximumf>, %25, %cst_25 [2] : vector<4x2x2xf32> to vector<4x2xf32>
    %27 = vector.shape_cast %26 : vector<4x2xf32> to vector<4x2x1xf32>
    %28 = vector.broadcast %27 : vector<4x2x1xf32> to vector<4x2x2xf32>
    %29 = arith.subf %25, %28 : vector<4x2x2xf32>
    %30 = math.exp %29 : vector<4x2x2xf32>
    %cst_26 = arith.constant dense<0.000000e+00> : vector<4x2xf32>
    %31 = vector.multi_reduction <add>, %30, %cst_26 [2] : vector<4x2x2xf32> to vector<4x2xf32>
    %32 = vector.shape_cast %31 : vector<4x2xf32> to vector<4x2x1xf32>
    %33 = arith.truncf %30 : vector<4x2x2xf32> to vector<4x2x2xbf16>
    %cst_27 = arith.constant dense<0.000000e+00> : vector<4x2x8xf32>
    %34 = tpu.matmul %33, %24, %cst_27 {dimension_numbers = #tpu.dot_dimension_numbers<[2], [1], [1], [2], [0, 0, 0, 1, 1, 2], [0], [0]>} : vector<4x2x2xbf16>, vector<4x2x8xbf16>, vector<4x2x8xf32> -> vector<4x2x8xf32>
    %35 = tpu.reciprocal %32 {approx = true} : vector<4x2x1xf32> -> vector<4x2x1xf32>
    %36 = vector.broadcast %35 : vector<4x2x1xf32> to vector<4x2x8xf32>
    %37 = arith.mulf %34, %36 : vector<4x2x8xf32>
    %38 = arith.truncf %37 : vector<4x2x8xf32> to vector<4x2x8xbf16>
    %c0_28 = arith.constant 0 : index
    %c0_29 = arith.constant 0 : index
    %c8_30 = arith.constant 8 : index
    %39 = vector.load %arg4[%c0_28, %c0_29, %c8_30] : memref<4x2x16xbf16, #tpu.memory_space<vmem>>, vector<4x2x8xbf16>
    tpu.vector_store %arg4[%c0_28, %c0_29, %c8_30], %38 {strides = array<i32>} : memref<4x2x16xbf16, #tpu.memory_space<vmem>>, vector<4x2x8xbf16>,
    return
  }
  func.func @transform_0(%arg0: i32) -> (i32, i32, i32) {
    %c0_i32 = arith.constant 0 : i32
    %c0_i32_0 = arith.constant 0 : i32
    %c0_i32_1 = arith.constant 0 : i32
    return %arg0, %c0_i32, %c0_i32_0 : i32, i32, i32
  }
  func.func @transform_1(%arg0: i32) -> (i32, i32, i32) {
    %c0_i32 = arith.constant 0 : i32
    %c0_i32_0 = arith.constant 0 : i32
    %c0_i32_1 = arith.constant 0 : i32
    return %arg0, %c0_i32, %c0_i32_0 : i32, i32, i32
  }
  func.func @transform_2(%arg0: i32) -> (i32, i32, i32) {
    %c0_i32 = arith.constant 0 : i32
    %c0_i32_0 = arith.constant 0 : i32
    %c0_i32_1 = arith.constant 0 : i32
    return %arg0, %c0_i32, %c0_i32_0 : i32, i32, i32
  }
  func.func @transform_3(%arg0: i32) -> (i32, i32, i32) {
    %c0_i32 = arith.constant 0 : i32
    %c0_i32_0 = arith.constant 0 : i32
    %c0_i32_1 = arith.constant 0 : i32
    return %arg0, %c0_i32, %c0_i32_0 : i32, i32, i32
  }
}

module attributes {stable_mosaic.version = 11 : i64} {
  func.func @_mha_kernel(%arg0: i32, %arg1: memref<2x4x16xbf16, #tpu.memory_space<vmem>>, %arg2: memref<2x4x16xbf16, #tpu.memory_space<vmem>>, %arg3: memref<2x4x16xbf16, #tpu.memory_space<vmem>>, %arg4: memref<2x4x16xbf16, #tpu.memory_space<vmem>>) attributes {dimension_semantics = [#tpu.dimension_semantics<parallel>], iteration_bounds = array<i64: 2>, scalar_prefetch = 0 : i64, scratch_operands = 0 : i64, tpu.core_type = #tpu.core_type<tc>, window_params = [{transform_indices = @transform_0, window_bounds = array<i64: 2, 4, 16>}, {transform_indices = @transform_1, window_bounds = array<i64: 2, 4, 16>}, {transform_indices = @transform_2, window_bounds = array<i64: 2, 4, 16>}, {transform_indices = @transform_3, window_bounds = array<i64: 2, 4, 16>}]} {
    %c0 = arith.constant 0 : index
    %c0_0 = arith.constant 0 : index
    %c0_1 = arith.constant 0 : index
    %0 = vector.load %arg1[%c0, %c0_0, %c0_1] : memref<2x4x16xbf16, #tpu.memory_space<vmem>>, vector<2x4x8xbf16>
    %cst = arith.constant 3.535160e-01 : bf16
    %1 = vector.broadcast %cst : bf16 to vector<2x4x8xbf16>
    %2 = arith.mulf %0, %1 : vector<2x4x8xbf16>
    %c0_2 = arith.constant 0 : index
    %c0_3 = arith.constant 0 : index
    %c0_4 = arith.constant 0 : index
    %3 = vector.load %arg2[%c0_2, %c0_3, %c0_4] : memref<2x4x16xbf16, #tpu.memory_space<vmem>>, vector<2x4x8xbf16>
    %c0_5 = arith.constant 0 : index
    %c0_6 = arith.constant 0 : index
    %c0_7 = arith.constant 0 : index
    %4 = vector.load %arg3[%c0_5, %c0_6, %c0_7] : memref<2x4x16xbf16, #tpu.memory_space<vmem>>, vector<2x4x8xbf16>
    %cst_8 = arith.constant dense<0.000000e+00> : vector<2x4x4xf32>
    %5 = tpu.matmul %2, %3, %cst_8 {dimension_numbers = #tpu.dot_dimension_numbers<[2], [2], [1], [1], [0, 0, 0, 1, 1, 1], [0], [0]>} : vector<2x4x8xbf16>, vector<2x4x8xbf16>, vector<2x4x4xf32> -> vector<2x4x4xf32>
    %cst_9 = arith.constant dense<0xFF800000> : vector<2x4xf32>
    %6 = vector.multi_reduction <maximumf>, %5, %cst_9 [2] : vector<2x4x4xf32> to vector<2x4xf32>
    %7 = vector.shape_cast %6 : vector<2x4xf32> to vector<2x4x1xf32>
    %8 = vector.broadcast %7 : vector<2x4x1xf32> to vector<2x4x4xf32>
    %9 = arith.subf %5, %8 : vector<2x4x4xf32>
    %10 = math.exp %9 : vector<2x4x4xf32>
    %cst_10 = arith.constant dense<0.000000e+00> : vector<2x4xf32>
    %11 = vector.multi_reduction <add>, %10, %cst_10 [2] : vector<2x4x4xf32> to vector<2x4xf32>
    %12 = vector.shape_cast %11 : vector<2x4xf32> to vector<2x4x1xf32>
    %13 = arith.truncf %10 : vector<2x4x4xf32> to vector<2x4x4xbf16>
    %cst_11 = arith.constant dense<0.000000e+00> : vector<2x4x8xf32>
    %14 = tpu.matmul %13, %4, %cst_11 {dimension_numbers = #tpu.dot_dimension_numbers<[2], [1], [1], [2], [0, 0, 0, 1, 1, 2], [0], [0]>} : vector<2x4x4xbf16>, vector<2x4x8xbf16>, vector<2x4x8xf32> -> vector<2x4x8xf32>
    %15 = tpu.reciprocal %12 {approx = true} : vector<2x4x1xf32> -> vector<2x4x1xf32>
    %16 = vector.broadcast %15 : vector<2x4x1xf32> to vector<2x4x8xf32>
    %17 = arith.mulf %14, %16 : vector<2x4x8xf32>
    %18 = arith.truncf %17 : vector<2x4x8xf32> to vector<2x4x8xbf16>
    %c0_12 = arith.constant 0 : index
    %c0_13 = arith.constant 0 : index
    %c0_14 = arith.constant 0 : index
    %19 = vector.load %arg4[%c0_12, %c0_13, %c0_14] : memref<2x4x16xbf16, #tpu.memory_space<vmem>>, vector<2x4x8xbf16>
    tpu.vector_store %arg4[%c0_12, %c0_13, %c0_14], %18 {strides = array<i32>} : memref<2x4x16xbf16, #tpu.memory_space<vmem>>, vector<2x4x8xbf16>,
    %c0_15 = arith.constant 0 : index
    %c0_16 = arith.constant 0 : index
    %c8 = arith.constant 8 : index
    %20 = vector.load %arg1[%c0_15, %c0_16, %c8] : memref<2x4x16xbf16, #tpu.memory_space<vmem>>, vector<2x4x8xbf16>
    %cst_17 = arith.constant 3.535160e-01 : bf16
    %21 = vector.broadcast %cst_17 : bf16 to vector<2x4x8xbf16>
    %22 = arith.mulf %20, %21 : vector<2x4x8xbf16>
    %c0_18 = arith.constant 0 : index
    %c0_19 = arith.constant 0 : index
    %c8_20 = arith.constant 8 : index
    %23 = vector.load %arg2[%c0_18, %c0_19, %c8_20] : memref<2x4x16xbf16, #tpu.memory_space<vmem>>, vector<2x4x8xbf16>
    %c0_21 = arith.constant 0 : index
    %c0_22 = arith.constant 0 : index
    %c8_23 = arith.constant 8 : index
    %24 = vector.load %arg3[%c0_21, %c0_22, %c8_23] : memref<2x4x16xbf16, #tpu.memory_space<vmem>>, vector<2x4x8xbf16>
    %cst_24 = arith.constant dense<0.000000e+00> : vector<2x4x4xf32>
    %25 = tpu.matmul %22, %23, %cst_24 {dimension_numbers = #tpu.dot_dimension_numbers<[2], [2], [1], [1], [0, 0, 0, 1, 1, 1], [0], [0]>} : vector<2x4x8xbf16>, vector<2x4x8xbf16>, vector<2x4x4xf32> -> vector<2x4x4xf32>
    %cst_25 = arith.constant dense<0xFF800000> : vector<2x4xf32>
    %26 = vector.multi_reduction <maximumf>, %25, %cst_25 [2] : vector<2x4x4xf32> to vector<2x4xf32>
    %27 = vector.shape_cast %26 : vector<2x4xf32> to vector<2x4x1xf32>
    %28 = vector.broadcast %27 : vector<2x4x1xf32> to vector<2x4x4xf32>
    %29 = arith.subf %25, %28 : vector<2x4x4xf32>
    %30 = math.exp %29 : vector<2x4x4xf32>
    %cst_26 = arith.constant dense<0.000000e+00> : vector<2x4xf32>
    %31 = vector.multi_reduction <add>, %30, %cst_26 [2] : vector<2x4x4xf32> to vector<2x4xf32>
    %32 = vector.shape_cast %31 : vector<2x4xf32> to vector<2x4x1xf32>
    %33 = arith.truncf %30 : vector<2x4x4xf32> to vector<2x4x4xbf16>
    %cst_27 = arith.constant dense<0.000000e+00> : vector<2x4x8xf32>
    %34 = tpu.matmul %33, %24, %cst_27 {dimension_numbers = #tpu.dot_dimension_numbers<[2], [1], [1], [2], [0, 0, 0, 1, 1, 2], [0], [0]>} : vector<2x4x4xbf16>, vector<2x4x8xbf16>, vector<2x4x8xf32> -> vector<2x4x8xf32>
    %35 = tpu.reciprocal %32 {approx = true} : vector<2x4x1xf32> -> vector<2x4x1xf32>
    %36 = vector.broadcast %35 : vector<2x4x1xf32> to vector<2x4x8xf32>
    %37 = arith.mulf %34, %36 : vector<2x4x8xf32>
    %38 = arith.truncf %37 : vector<2x4x8xf32> to vector<2x4x8xbf16>
    %c0_28 = arith.constant 0 : index
    %c0_29 = arith.constant 0 : index
    %c8_30 = arith.constant 8 : index
    %39 = vector.load %arg4[%c0_28, %c0_29, %c8_30] : memref<2x4x16xbf16, #tpu.memory_space<vmem>>, vector<2x4x8xbf16>
    tpu.vector_store %arg4[%c0_28, %c0_29, %c8_30], %38 {strides = array<i32>} : memref<2x4x16xbf16, #tpu.memory_space<vmem>>, vector<2x4x8xbf16>,
    return
  }
  func.func @transform_0(%arg0: i32) -> (i32, i32, i32) {
    %c0_i32 = arith.constant 0 : i32
    %c0_i32_0 = arith.constant 0 : i32
    %c0_i32_1 = arith.constant 0 : i32
    return %arg0, %c0_i32, %c0_i32_0 : i32, i32, i32
  }
  func.func @transform_1(%arg0: i32) -> (i32, i32, i32) {
    %c0_i32 = arith.constant 0 : i32
    %c0_i32_0 = arith.constant 0 : i32
    %c0_i32_1 = arith.constant 0 : i32
    return %arg0, %c0_i32, %c0_i32_0 : i32, i32, i32
  }
  func.func @transform_2(%arg0: i32) -> (i32, i32, i32) {
    %c0_i32 = arith.constant 0 : i32
    %c0_i32_0 = arith.constant 0 : i32
    %c0_i32_1 = arith.constant 0 : i32
    return %arg0, %c0_i32, %c0_i32_0 : i32, i32, i32
  }
  func.func @transform_3(%arg0: i32) -> (i32, i32, i32) {
    %c0_i32 = arith.constant 0 : i32
    %c0_i32_0 = arith.constant 0 : i32
    %c0_i32_1 = arith.constant 0 : i32
    return %arg0, %c0_i32, %c0_i32_0 : i32, i32, i32
  }
}

module attributes {stable_mosaic.version = 11 : i64} {
  func.func @_fused_linear_kernel(%arg0: i32, %arg1: i32, %arg2: memref<16x16xbf16, #tpu.memory_space<vmem>>, %arg3: memref<16x32xbf16, #tpu.memory_space<vmem>>, %arg4: memref<16x16xbf16, #tpu.memory_space<vmem>>, %arg5: memref<16x32xbf16, #tpu.memory_space<vmem>>, %arg6: memref<1x32xf32, #tpu.memory_space<vmem>>, %arg7: memref<16x32xf32, #tpu.memory_space<vmem>>, %arg8: memref<16x32xf32, #tpu.memory_space<vmem>>) attributes {dimension_semantics = [#tpu.dimension_semantics<parallel>, #tpu.dimension_semantics<parallel>], iteration_bounds = array<i64: 1, 1>, scalar_prefetch = 0 : i64, scratch_operands = 0 : i64, tpu.core_type = #tpu.core_type<tc>, window_params = [{transform_indices = @transform_0, window_bounds = array<i64: 16, 16>}, {transform_indices = @transform_1, window_bounds = array<i64: 16, 32>}, {transform_indices = @transform_2, window_bounds = array<i64: 16, 16>}, {transform_indices = @transform_3, window_bounds = array<i64: 16, 32>}, {transform_indices = @transform_4, window_bounds = array<i64: 1, 32>}, {transform_indices = @transform_5, window_bounds = array<i64: 16, 32>}, {transform_indices = @transform_6, window_bounds = array<i64: 16, 32>}]} {
    %c0 = arith.constant 0 : index
    %c0_0 = arith.constant 0 : index
    %0 = vector.load %arg2[%c0, %c0_0] : memref<16x16xbf16, #tpu.memory_space<vmem>>, vector<16x16xbf16>
    %c0_1 = arith.constant 0 : index
    %c0_2 = arith.constant 0 : index
    %1 = vector.load %arg3[%c0_1, %c0_2] : memref<16x32xbf16, #tpu.memory_space<vmem>>, vector<16x32xbf16>
    %cst = arith.constant dense<0.000000e+00> : vector<16x32xf32>
    %2 = tpu.matmul %0, %1, %cst {dimension_numbers = #tpu.dot_dimension_numbers<[1], [0], [0], [1], [0, 0, 1, 1], [], []>} : vector<16x16xbf16>, vector<16x32xbf16>, vector<16x32xf32> -> vector<16x32xf32>
    %c0_3 = arith.constant 0 : index
    %c0_4 = arith.constant 0 : index
    %3 = vector.load %arg4[%c0_3, %c0_4] : memref<16x16xbf16, #tpu.memory_space<vmem>>, vector<16x16xbf16>
    %c0_5 = arith.constant 0 : index
    %c0_6 = arith.constant 0 : index
    %4 = vector.load %arg5[%c0_5, %c0_6] : memref<16x32xbf16, #tpu.memory_space<vmem>>, vector<16x32xbf16>
    %cst_7 = arith.constant dense<0.000000e+00> : vector<16x32xf32>
    %5 = tpu.matmul %3, %4, %cst_7 {dimension_numbers = #tpu.dot_dimension_numbers<[1], [0], [0], [1], [0, 0, 1, 1], [], []>} : vector<16x16xbf16>, vector<16x32xbf16>, vector<16x32xf32> -> vector<16x32xf32>
    %6 = arith.addf %2, %5 : vector<16x32xf32>
    %c0_8 = arith.constant 0 : index
    %c0_9 = arith.constant 0 : index
    %7 = vector.load %arg6[%c0_8, %c0_9] : memref<1x32xf32, #tpu.memory_space<vmem>>, vector<1x32xf32>
    %8 = vector.broadcast %7 : vector<1x32xf32> to vector<16x32xf32>
    %9 = arith.addf %6, %8 : vector<16x32xf32>
    %c0_10 = arith.constant 0 : index
    %c0_11 = arith.constant 0 : index
    %10 = vector.load %arg7[%c0_10, %c0_11] : memref<16x32xf32, #tpu.memory_space<vmem>>, vector<16x32xf32>
    %11 = arith.addf %9, %10 : vector<16x32xf32>
    %c0_12 = arith.constant 0 : index
    %c0_13 = arith.constant 0 : index
    %12 = vector.load %arg8[%c0_12, %c0_13] : memref<16x32xf32, #tpu.memory_space<vmem>>, vector<16x32xf32>
    tpu.vector_store %arg8[%c0_12, %c0_13], %11 {strides = array<i32>} : memref<16x32xf32, #tpu.memory_space<vmem>>, vector<16x32xf32>,
    return
  }
  func.func @transform_0(%arg0: i32, %arg1: i32) -> (i32, i32) {
    %c0_i32 = arith.constant 0 : i32
    %c0_i32_0 = arith.constant 0 : i32
    return %arg0, %c0_i32 : i32, i32
  }
  func.func @transform_1(%arg0: i32, %arg1: i32) -> (i32, i32) {
    %c0_i32 = arith.constant 0 : i32
    %c0_i32_0 = arith.constant 0 : i32
    return %c0_i32, %arg1 : i32, i32
  }
  func.func @transform_2(%arg0: i32, %arg1: i32) -> (i32, i32) {
    %c0_i32 = arith.constant 0 : i32
    %c0_i32_0 = arith.constant 0 : i32
    return %arg0, %c0_i32 : i32, i32
  }
  func.func @transform_3(%arg0: i32, %arg1: i32) -> (i32, i32) {
    %c0_i32 = arith.constant 0 : i32
    %c0_i32_0 = arith.constant 0 : i32
    return %c0_i32, %arg1 : i32, i32
  }
  func.func @transform_4(%arg0: i32, %arg1: i32) -> (i32, i32) {
    %c0_i32 = arith.constant 0 : i32
    %c0_i32_0 = arith.constant 0 : i32
    return %c0_i32, %arg1 : i32, i32
  }
  func.func @transform_5(%arg0: i32, %arg1: i32) -> (i32, i32) {
    %c0_i32 = arith.constant 0 : i32
    return %arg0, %arg1 : i32, i32
  }
  func.func @transform_6(%arg0: i32, %arg1: i32) -> (i32, i32) {
    %c0_i32 = arith.constant 0 : i32
    return %arg0, %arg1 : i32, i32
  }
}

module attributes {stable_mosaic.version = 11 : i64} {
  func.func @_fused_linear_kernel(%arg0: i32, %arg1: i32, %arg2: memref<16x32xf32, #tpu.memory_space<vmem>>, %arg3: memref<1x32xf32, #tpu.memory_space<vmem>>, %arg4: memref<1x32xf32, #tpu.memory_space<vmem>>, %arg5: memref<32x64xbf16, #tpu.memory_space<vmem>>, %arg6: memref<1x64xf32, #tpu.memory_space<vmem>>, %arg7: memref<16x64xbf16, #tpu.memory_space<vmem>>) attributes {dimension_semantics = [#tpu.dimension_semantics<parallel>, #tpu.dimension_semantics<parallel>], iteration_bounds = array<i64: 1, 1>, scalar_prefetch = 0 : i64, scratch_operands = 0 : i64, tpu.core_type = #tpu.core_type<tc>, window_params = [{transform_indices = @transform_0, window_bounds = array<i64: 16, 32>}, {pipeline_mode = #tpu.pipeline_mode<synchronous>, transform_indices = @transform_1, window_bounds = array<i64: 1, 32>}, {pipeline_mode = #tpu.pipeline_mode<synchronous>, transform_indices = @transform_2, window_bounds = array<i64: 1, 32>}, {transform_indices = @transform_3, window_bounds = array<i64: 32, 64>}, {transform_indices = @transform_4, window_bounds = array<i64: 1, 64>}, {transform_indices = @transform_5, window_bounds = array<i64: 16, 64>}]} {
    %c0 = arith.constant 0 : index
    %c0_0 = arith.constant 0 : index
    %0 = vector.load %arg2[%c0, %c0_0] : memref<16x32xf32, #tpu.memory_space<vmem>>, vector<16x32xf32>
    %cst = arith.constant dense<0.000000e+00> : vector<16xf32>
    %1 = vector.multi_reduction <add>, %0, %cst [1] : vector<16x32xf32> to vector<16xf32>
    %2 = vector.shape_cast %1 : vector<16xf32> to vector<16x1xf32>
    %cst_1 = arith.constant 3.200000e+01 : f32
    %3 = vector.broadcast %cst_1 : f32 to vector<16x1xf32>
    %4 = arith.divf %2, %3 : vector<16x1xf32>
    %5 = vector.broadcast %4 : vector<16x1xf32> to vector<16x32xf32>
    %6 = arith.subf %0, %5 : vector<16x32xf32>
    %7 = arith.mulf %6, %6 : vector<16x32xf32>
    %cst_2 = arith.constant dense<0.000000e+00> : vector<16xf32>
    %8 = vector.multi_reduction <add>, %7, %cst_2 [1] : vector<16x32xf32> to vector<16xf32>
    %9 = vector.shape_cast %8 : vector<16xf32> to vector<16x1xf32>
    %cst_3 = arith.constant 3.200000e+01 : f32
    %10 = vector.broadcast %cst_3 : f32 to vector<16x1xf32>
    %11 = arith.divf %9, %10 : vector<16x1xf32>
    %12 = vector.broadcast %4 : vector<16x1xf32> to vector<16x32xf32>
    %13 = arith.subf %0, %12 : vector<16x32xf32>
    %cst_4 = arith.constant 9.99999974E-6 : f32
    %14 = vector.broadcast %cst_4 : f32 to vector<16x1xf32>
    %15 = arith.addf %11, %14 : vector<16x1xf32>
    %16 = math.rsqrt %15 : vector<16x1xf32>
    %17 = vector.broadcast %16 : vector<16x1xf32> to vector<16x32xf32>
    %18 = arith.mulf %13, %17 : vector<16x32xf32>
    %c0_5 = arith.constant 0 : index
    %c0_6 = arith.constant 0 : index
    %19 = vector.load %arg3[%c0_5, %c0_6] : memref<1x32xf32, #tpu.memory_space<vmem>>, vector<1x32xf32>
    %20 = vector.broadcast %19 : vector<1x32xf32> to vector<16x32xf32>
    %21 = arith.mulf %18, %20 : vector<16x32xf32>
    %c0_7 = arith.constant 0 : index
    %c0_8 = arith.constant 0 : index
    %22 = vector.load %arg4[%c0_7, %c0_8] : memref<1x32xf32, #tpu.memory_space<vmem>>, vector<1x32xf32>
    %23 = vector.broadcast %22 : vector<1x32xf32> to vector<16x32xf32>
    %24 = arith.addf %21, %23 : vector<16x32xf32>
    %25 = arith.truncf %24 : vector<16x32xf32> to vector<16x32xbf16>
    %c0_9 = arith.constant 0 : index
    %c0_10 = arith.constant 0 : index
    %26 = vector.load %arg5[%c0_9, %c0_10] : memref<32x64xbf16, #tpu.memory_space<vmem>>, vector<32x64xbf16>
    %cst_11 = arith.constant dense<0.000000e+00> : vector<16x64xf32>
    %27 = tpu.matmul %25, %26, %cst_11 {dimension_numbers = #tpu.dot_dimension_numbers<[1], [0], [0], [1], [0, 0, 1, 1], [], []>} : vector<16x32xbf16>, vector<32x64xbf16>, vector<16x64xf32> -> vector<16x64xf32>
    %c0_12 = arith.constant 0 : index
    %c0_13 = arith.constant 0 : index
    %28 = vector.load %arg6[%c0_12, %c0_13] : memref<1x64xf32, #tpu.memory_space<vmem>>, vector<1x64xf32>
    %29 = vector.broadcast %28 : vector<1x64xf32> to vector<16x64xf32>
    %30 = arith.addf %27, %29 : vector<16x64xf32>
    %31 = arith.mulf %30, %30 : vector<16x64xf32>
    %32 = arith.mulf %30, %31 : vector<16x64xf32>
    %cst_14 = arith.constant 4.471500e-02 : f32
    %33 = vector.broadcast %cst_14 : f32 to vector<16x64xf32>
    %34 = arith.mulf %33, %32 : vector<16x64xf32>
    %35 = arith.addf %30, %34 : vector<16x64xf32>
    %cst_15 = arith.constant 0.797884583 : f32
    %36 = vector.broadcast %cst_15 : f32 to vector<16x64xf32>
    %37 = arith.mulf %36, %35 : vector<16x64xf32>
    %38 = math.tanh %37 : vector<16x64xf32>
    %cst_16 = arith.constant 1.000000e+00 : f32
    %39 = vector.broadcast %cst_16 : f32 to vector<16x64xf32>
    %40 = arith.addf %39, %38 : vector<16x64xf32>
    %cst_17 = arith.constant 5.000000e-01 : f32
    %41 = vector.broadcast %cst_17 : f32 to vector<16x64xf32>
    %42 = arith.mulf %41, %40 : vector<16x64xf32>
    %43 = arith.mulf %30, %42 : vector<16x64xf32>
    %44 = arith.truncf %43 : vector<16x64xf32> to vector<16x64xbf16>
    %c0_18 = arith.constant 0 : index
    %c0_19 = arith.constant 0 : index
    %45 = vector.load %arg7[%c0_18, %c0_19] : memref<16x64xbf16, #tpu.memory_space<vmem>>, vector<16x64xbf16>
    tpu.vector_store %arg7[%c0_18, %c0_19], %44 {strides = array<i32>} : memref<16x64xbf16, #tpu.memory_space<vmem>>, vector<16x64xbf16>,
    return
  }
  func.func @transform_0(%arg0: i32, %arg1: i32) -> (i32, i32) {
    %c0_i32 = arith.constant 0 : i32
    %c0_i32_0 = arith.constant 0 : i32
    return %arg0, %c0_i32 : i32, i32
  }
  func.func @transform_1(%arg0: i32, %arg1: i32) -> (i32, i32) {
    %c0_i32 = arith.constant 0 : i32
    %c0_i32_0 = arith.constant 0 : i32
    %c0_i32_1 = arith.constant 0 : i32
    return %c0_i32, %c0_i32_0 : i32, i32
  }
  func.func @transform_2(%arg0: i32, %arg1: i32) -> (i32, i32) {
    %c0_i32 = arith.constant 0 : i32
    %c0_i32_0 = arith.constant 0 : i32
    %c0_i32_1 = arith.constant 0 : i32
    return %c0_i32, %c0_i32_0 : i32, i32
  }
  func.func @transform_3(%arg0: i32, %arg1: i32) -> (i32, i32) {
    %c0_i32 = arith.constant 0 : i32
    %c0_i32_0 = arith.constant 0 : i32
    return %c0_i32, %arg1 : i32, i32
  }
  func.func @transform_4(%arg0: i32, %arg1: i32) -> (i32, i32) {
    %c0_i32 = arith.constant 0 : i32
    %c0_i32_0 = arith.constant 0 : i32
    return %c0_i32, %arg1 : i32, i32
  }
  func.func @transform_5(%arg0: i32, %arg1: i32) -> (i32, i32) {
    %c0_i32 = arith.constant 0 : i32
    return %arg0, %arg1 : i32, i32
  }
}

module attributes {stable_mosaic.version = 11 : i64} {
  func.func @_fused_linear_kernel(%arg0: i32, %arg1: i32, %arg2: memref<16x64xbf16, #tpu.memory_space<vmem>>, %arg3: memref<64x32xbf16, #tpu.memory_space<vmem>>, %arg4: memref<1x32xf32, #tpu.memory_space<vmem>>, %arg5: memref<16x32xf32, #tpu.memory_space<vmem>>, %arg6: memref<16x32xf32, #tpu.memory_space<vmem>>) attributes {dimension_semantics = [#tpu.dimension_semantics<parallel>, #tpu.dimension_semantics<parallel>], iteration_bounds = array<i64: 1, 1>, scalar_prefetch = 0 : i64, scratch_operands = 0 : i64, tpu.core_type = #tpu.core_type<tc>, window_params = [{transform_indices = @transform_0, window_bounds = array<i64: 16, 64>}, {transform_indices = @transform_1, window_bounds = array<i64: 64, 32>}, {transform_indices = @transform_2, window_bounds = array<i64: 1, 32>}, {transform_indices = @transform_3, window_bounds = array<i64: 16, 32>}, {transform_indices = @transform_4, window_bounds = array<i64: 16, 32>}]} {
    %c0 = arith.constant 0 : index
    %c0_0 = arith.constant 0 : index
    %0 = vector.load %arg2[%c0, %c0_0] : memref<16x64xbf16, #tpu.memory_space<vmem>>, vector<16x64xbf16>
    %c0_1 = arith.constant 0 : index
    %c0_2 = arith.constant 0 : index
    %1 = vector.load %arg3[%c0_1, %c0_2] : memref<64x32xbf16, #tpu.memory_space<vmem>>, vector<64x32xbf16>
    %cst = arith.constant dense<0.000000e+00> : vector<16x32xf32>
    %2 = tpu.matmul %0, %1, %cst {dimension_numbers = #tpu.dot_dimension_numbers<[1], [0], [0], [1], [0, 0, 1, 1], [], []>} : vector<16x64xbf16>, vector<64x32xbf16>, vector<16x32xf32> -> vector<16x32xf32>
    %c0_3 = arith.constant 0 : index
    %c0_4 = arith.constant 0 : index
    %3 = vector.load %arg4[%c0_3, %c0_4] : memref<1x32xf32, #tpu.memory_space<vmem>>, vector<1x32xf32>
    %4 = vector.broadcast %3 : vector<1x32xf32> to vector<16x32xf32>
    %5 = arith.addf %2, %4 : vector<16x32xf32>
    %c0_5 = arith.constant 0 : index
    %c0_6 = arith.constant 0 : index
    %6 = vector.load %arg5[%c0_5, %c0_6] : memref<16x32xf32, #tpu.memory_space<vmem>>, vector<16x32xf32>
    %7 = arith.addf %5, %6 : vector<16x32xf32>
    %c0_7 = arith.constant 0 : index
    %c0_8 = arith.constant 0 : index
    %8 = vector.load %arg6[%c0_7, %c0_8] : memref<16x32xf32, #tpu.memory_space<vmem>>, vector<16x32xf32>
    tpu.vector_store %arg6[%c0_7, %c0_8], %7 {strides = array<i32>} : memref<16x32xf32, #tpu.memory_space<vmem>>, vector<16x32xf32>,
    return
  }
  func.func @transform_0(%arg0: i32, %arg1: i32) -> (i32, i32) {
    %c0_i32 = arith.constant 0 : i32
    %c0_i32_0 = arith.constant 0 : i32
    return %arg0, %c0_i32 : i32, i32
  }
  func.func @transform_1(%arg0: i32, %arg1: i32) -> (i32, i32) {
    %c0_i32 = arith.constant 0 : i32
    %c0_i32_0 = arith.constant 0 : i32
    return %c0_i32, %arg1 : i32, i32
  }
  func.func @transform_2(%arg0: i32, %arg1: i32) -> (i32, i32) {
    %c0_i32 = arith.constant 0 : i32
    %c0_i32_0 = arith.constant 0 : i32
    return %c0_i32, %arg1 : i32, i32
  }
  func.func @transform_3(%arg0: i32, %arg1: i32) -> (i32, i32) {
    %c0_i32 = arith.constant 0 : i32
    return %arg0, %arg1 : i32, i32
  }
  func.func @transform_4(%arg0: i32, %arg1: i32) -> (i32, i32) {
    %c0_i32 = arith.constant 0 : i32
    return %arg0, %arg1 : i32, i32
  }
}

module attributes {stable_mosaic.version = 11 : i64} {
  func.func @_pool_head_kernel(%arg0: i32, %arg1: memref<2x8x32xf32, #tpu.memory_space<vmem>>, %arg2: memref<1x32xf32, #tpu.memory_space<vmem>>, %arg3: memref<1x32xf32, #tpu.memory_space<vmem>>, %arg4: memref<32x10xbf16, #tpu.memory_space<vmem>>, %arg5: memref<1x10xf32, #tpu.memory_space<vmem>>, %arg6: memref<2x10xf32, #tpu.memory_space<vmem>>, %arg7: memref<2x32xf32, #tpu.memory_space<vmem>>) attributes {dimension_semantics = [#tpu.dimension_semantics<arbitrary>], iteration_bounds = array<i64: 1>, scalar_prefetch = 0 : i64, scratch_operands = 1 : i64, tpu.core_type = #tpu.core_type<tc>, window_params = [{transform_indices = @transform_0, window_bounds = array<i64: 2, 8, 32>}, {pipeline_mode = #tpu.pipeline_mode<synchronous>, transform_indices = @transform_1, window_bounds = array<i64: 1, 32>}, {pipeline_mode = #tpu.pipeline_mode<synchronous>, transform_indices = @transform_2, window_bounds = array<i64: 1, 32>}, {pipeline_mode = #tpu.pipeline_mode<synchronous>, transform_indices = @transform_3, window_bounds = array<i64: 32, 10>}, {pipeline_mode = #tpu.pipeline_mode<synchronous>, transform_indices = @transform_4, window_bounds = array<i64: 1, 10>}, {pipeline_mode = #tpu.pipeline_mode<synchronous>, transform_indices = @transform_5, window_bounds = array<i64: 2, 10>}]} {
    %c0_i32 = arith.constant 0 : i32
    %0 = arith.cmpi eq, %arg0, %c0_i32 : i32
    %1 = arith.extui %0 : i1 to i32
    %c0_i32_0 = arith.constant 0 : i32
    %2 = arith.cmpi ne, %1, %c0_i32_0 : i32
    scf.if %2 {
      %cst_18 = arith.constant 0.000000e+00 : f32
      %37 = vector.broadcast %cst_18 : f32 to vector<2x32xf32>
      %c0_19 = arith.constant 0 : index
      %c0_20 = arith.constant 0 : index
      %38 = vector.load %arg7[%c0_19, %c0_20] : memref<2x32xf32, #tpu.memory_space<vmem>>, vector<2x32xf32>
      tpu.vector_store %arg7[%c0_19, %c0_20], %37 {strides = array<i32>} : memref<2x32xf32, #tpu.memory_space<vmem>>, vector<2x32xf32>,
    } else {
    }
    %c0 = arith.constant 0 : index
    %c0_1 = arith.constant 0 : index
    %c0_2 = arith.constant 0 : index
    %3 = vector.load %arg1[%c0, %c0_1, %c0_2] : memref<2x8x32xf32, #tpu.memory_space<vmem>>, vector<2x8x32xf32>
    %cst = arith.constant dense<0.000000e+00> : vector<2x8xf32>
    %4 = vector.multi_reduction <add>, %3, %cst [2] : vector<2x8x32xf32> to vector<2x8xf32>
    %5 = vector.shape_cast %4 : vector<2x8xf32> to vector<2x8x1xf32>
    %cst_3 = arith.constant 3.200000e+01 : f32
    %6 = vector.broadcast %cst_3 : f32 to vector<2x8x1xf32>
    %7 = arith.divf %5, %6 : vector<2x8x1xf32>
    %8 = vector.broadcast %7 : vector<2x8x1xf32> to vector<2x8x32xf32>
    %9 = arith.subf %3, %8 : vector<2x8x32xf32>
    %10 = arith.mulf %9, %9 : vector<2x8x32xf32>
    %cst_4 = arith.constant dense<0.000000e+00> : vector<2x8xf32>
    %11 = vector.multi_reduction <add>, %10, %cst_4 [2] : vector<2x8x32xf32> to vector<2x8xf32>
    %12 = vector.shape_cast %11 : vector<2x8xf32> to vector<2x8x1xf32>
    %cst_5 = arith.constant 3.200000e+01 : f32
    %13 = vector.broadcast %cst_5 : f32 to vector<2x8x1xf32>
    %14 = arith.divf %12, %13 : vector<2x8x1xf32>
    %15 = vector.broadcast %7 : vector<2x8x1xf32> to vector<2x8x32xf32>
    %16 = arith.subf %3, %15 : vector<2x8x32xf32>
    %cst_6 = arith.constant 9.99999974E-6 : f32
    %17 = vector.broadcast %cst_6 : f32 to vector<2x8x1xf32>
    %18 = arith.addf %14, %17 : vector<2x8x1xf32>
    %19 = math.rsqrt %18 : vector<2x8x1xf32>
    %20 = vector.broadcast %19 : vector<2x8x1xf32> to vector<2x8x32xf32>
    %21 = arith.mulf %16, %20 : vector<2x8x32xf32>
    %c0_7 = arith.constant 0 : index
    %c0_8 = arith.constant 0 : index
    %22 = vector.load %arg2[%c0_7, %c0_8] : memref<1x32xf32, #tpu.memory_space<vmem>>, vector<1x32xf32>
    %23 = vector.shape_cast %22 : vector<1x32xf32> to vector<1x1x32xf32>
    %24 = vector.broadcast %23 : vector<1x1x32xf32> to vector<2x8x32xf32>
    %25 = arith.mulf %21, %24 : vector<2x8x32xf32>
    %c0_9 = arith.constant 0 : index
    %c0_10 = arith.constant 0 : index
    %26 = vector.load %arg3[%c0_9, %c0_10] : memref<1x32xf32, #tpu.memory_space<vmem>>, vector<1x32xf32>
    %27 = vector.shape_cast %26 : vector<1x32xf32> to vector<1x1x32xf32>
    %28 = vector.broadcast %27 : vector<1x1x32xf32> to vector<2x8x32xf32>
    %29 = arith.addf %25, %28 : vector<2x8x32xf32>
    %c0_11 = arith.constant 0 : index
    %c0_12 = arith.constant 0 : index
    %30 = vector.load %arg7[%c0_11, %c0_12] : memref<2x32xf32, #tpu.memory_space<vmem>>, vector<2x32xf32>
    %cst_13 = arith.constant dense<0.000000e+00> : vector<2x32xf32>
    %31 = vector.multi_reduction <add>, %29, %cst_13 [1] : vector<2x8x32xf32> to vector<2x32xf32>
    %32 = arith.addf %30, %31 : vector<2x32xf32>
    %c0_14 = arith.constant 0 : index
    %c0_15 = arith.constant 0 : index
    %33 = vector.load %arg7[%c0_14, %c0_15] : memref<2x32xf32, #tpu.memory_space<vmem>>, vector<2x32xf32>
    tpu.vector_store %arg7[%c0_14, %c0_15], %32 {strides = array<i32>} : memref<2x32xf32, #tpu.memory_space<vmem>>, vector<2x32xf32>,
    %c0_i32_16 = arith.constant 0 : i32
    %34 = arith.cmpi eq, %arg0, %c0_i32_16 : i32
    %35 = arith.extui %34 : i1 to i32
    %c0_i32_17 = arith.constant 0 : i32
    %36 = arith.cmpi ne, %35, %c0_i32_17 : i32
    scf.if %36 {
      %c0_18 = arith.constant 0 : index
      %c0_19 = arith.constant 0 : index
      %37 = vector.load %arg7[%c0_18, %c0_19] : memref<2x32xf32, #tpu.memory_space<vmem>>, vector<2x32xf32>
      %cst_20 = arith.constant 1.250000e-01 : f32
      %38 = vector.broadcast %cst_20 : f32 to vector<2x32xf32>
      %39 = arith.mulf %37, %38 : vector<2x32xf32>
      %40 = arith.truncf %39 : vector<2x32xf32> to vector<2x32xbf16>
      %c0_21 = arith.constant 0 : index
      %c0_22 = arith.constant 0 : index
      %41 = vector.load %arg4[%c0_21, %c0_22] : memref<32x10xbf16, #tpu.memory_space<vmem>>, vector<32x10xbf16>
      %cst_23 = arith.constant dense<0.000000e+00> : vector<2x10xf32>
      %42 = tpu.matmul %40, %41, %cst_23 {dimension_numbers = #tpu.dot_dimension_numbers<[1], [0], [0], [1], [0, 0, 1, 1], [], []>} : vector<2x32xbf16>, vector<32x10xbf16>, vector<2x10xf32> -> vector<2x10xf32>
      %c0_24 = arith.constant 0 : index
      %c0_25 = arith.constant 0 : index
      %43 = vector.load %arg5[%c0_24, %c0_25] : memref<1x10xf32, #tpu.memory_space<vmem>>, vector<1x10xf32>
      %44 = vector.broadcast %43 : vector<1x10xf32> to vector<2x10xf32>
      %45 = arith.addf %42, %44 : vector<2x10xf32>
      %c0_26 = arith.constant 0 : index
      %c0_27 = arith.constant 0 : index
      %46 = vector.load %arg6[%c0_26, %c0_27] : memref<2x10xf32, #tpu.memory_space<vmem>>, vector<2x10xf32>
      tpu.vector_store %arg6[%c0_26, %c0_27], %45 {strides = array<i32>} : memref<2x10xf32, #tpu.memory_space<vmem>>, vector<2x10xf32>,
    } else {
    }
    return
  }
  func.func @transform_0(%arg0: i32) -> (i32, i32, i32) {
    %c0_i32 = arith.constant 0 : i32
    %c0_i32_0 = arith.constant 0 : i32
    %c0_i32_1 = arith.constant 0 : i32
    return %c0_i32, %arg0, %c0_i32_0 : i32, i32, i32
  }
  func.func @transform_1(%arg0: i32) -> (i32, i32) {
    %c0_i32 = arith.constant 0 : i32
    %c0_i32_0 = arith.constant 0 : i32
    %c0_i32_1 = arith.constant 0 : i32
    return %c0_i32, %c0_i32_0 : i32, i32
  }
  func.func @transform_2(%arg0: i32) -> (i32, i32) {
    %c0_i32 = arith.constant 0 : i32
    %c0_i32_0 = arith.constant 0 : i32
    %c0_i32_1 = arith.constant 0 : i32
    return %c0_i32, %c0_i32_0 : i32, i32
  }
  func.func @transform_3(%arg0: i32) -> (i32, i32) {
    %c0_i32 = arith.constant 0 : i32
    %c0_i32_0 = arith.constant 0 : i32
    %c0_i32_1 = arith.constant 0 : i32
    return %c0_i32, %c0_i32_0 : i32, i32
  }
  func.func @transform_4(%arg0: i32) -> (i32, i32) {
    %c0_i32 = arith.constant 0 : i32
    %c0_i32_0 = arith.constant 0 : i32
    %c0_i32_1 = arith.constant 0 : i32
    return %c0_i32, %c0_i32_0 : i32, i32
  }
  func.func @transform_5(%arg0: i32) -> (i32, i32) {
    %c0_i32 = arith.constant 0 : i32
    %c0_i32_0 = arith.constant 0 : i32
    %c0_i32_1 = arith.constant 0 : i32
    return %c0_i32, %c0_i32_0 : i32, i32
  }
}

</mosaic_0001>

<bundles_post_ra>
// kernel: _lambda_.15
= control target key start
LH: loop header
LB: loop body
LE: loop exit
PB: predicated region body
PF: predicated region fallthrough
CT: control target
= control target key end

     0   :  { %vm23_vm0 = vcmask 261120   ;;  %v181_v14 = vmov 0.0   ;;  %vm182_vm1 = vmmov 0   ;;  %vm145_vm2 = vcmask 781312   ;;  %s245_s0 = inlined_call_operand.vmem [shape: f32[16,32], index: 0, kind: input, shape index: {}]   ;;  %s246_s3 = inlined_call_operand.vmem [shape: bf16[32,96], index: 3, kind: input, shape index: {}]   ;;  %s247_s1 = inlined_call_operand.vmem [shape: f32[1,32], index: 1, kind: input, shape index: {}]   ;;  %s248_s2 = inlined_call_operand.vmem [shape: f32[1,32], index: 2, kind: input, shape index: {}]   ;;  %s249_s4 = inlined_call_operand.vmem [shape: f32[1,96], index: 4, kind: input, shape index: {}]   ;;  %s250_s5 = inlined_call_operand.vmem [shape: bf16[16,96], index: 5, kind: output, shape index: {}]  }
   0x1   :  { %v21_v0 = vld [vmem:[%s245_s0] sm:$0xff]  ;;  %v22_v1 = vld [vmem:[%s245_s0 + $0x8] sm:$0xff]  ;;  %165 = vmatprep.subr.bf16.mxu0 %v181_v14  ;;  %169 = vmatprep.mubr.msk.bf16.mxu0 %vm182_vm1, %v181_v14 }
   0x2   :  { %v24_v2 = vsel %vm23_vm0, %v21_v0, 0.0  ;;  %v27_v3 = vsel %vm23_vm0, %v22_v1, 0.0  ;;  %v175_v15 = vld [vmem:[%s246_s3 + $0x8] sm:$0xff]   ;;  %v176_v16 = vld [vmem:[%s246_s3] sm:$0xff]  }
   0x3   :  { %25 = vadd.xlane.f32.xlu0 %v24_v2  ;;  %166 = vmatpush3.bf16.msra.mxu0 %v175_v15  ;;  %v152_v25 = vld [vmem:[%s247_s1] ss:$0 sm:$0xff] }
   0x4   :  { %167 = vmatprep.subr.bf16.mxu0 %v181_v14  ;;  %v153_v29 = vld [vmem:[%s248_s2] ss:$0 sm:$0xff] }
   0x5   :  { %v154_v34 = vld [vmem:[%s249_s4] ss:$0 sm:$0xff] }
   0x7   :  { %28 = vadd.xlane.f32.xlu0 %v27_v3  ;;  %168 = vmatpush3.bf16.msra.mxu0 %v176_v16 }
  0x8c   :  { %v26_v4 = vpop.xlane.xlu0 %25 }
  0x8d   :  { %v31_v5 = vmul.f32 0.03125, %v26_v4 }
  0x8f   :  { %v33_v6 = vsub.f32 %v21_v0, %v31_v5 }
  0x90   :  { %v29_v7 = vpop.xlane.xlu0 %28 }
  0x91   :  { %v32_v8 = vmul.f32 0.03125, %v29_v7  ;;  %v35_v9 = vmul.f32 %v33_v6, %v33_v6 }
  0x93   :  { %v34_v10 = vsub.f32 %v22_v1, %v32_v8  ;;  %v37_v11 = vsel %vm23_vm0, %v35_v9, 0.0 }
  0x94   :  { %38 = vadd.xlane.f32.xlu1 %v37_v11 }
  0x95   :  { %v36_v12 = vmul.f32 %v34_v10, %v34_v10 }
  0x97   :  { %v40_v13 = vsel %vm23_vm0, %v36_v12, 0.0 }
  0x98   :  { %41 = vadd.xlane.f32.xlu1 %v40_v13 }
 0x11d   :  { %v39_v17 = vpop.xlane.xlu1 %38 }
 0x11e   :  { %v43_v18 = vmul.f32 0.03125, %v39_v17 }
 0x120   :  { %v45_v19 = vadd.f32 1e-05, %v43_v18 }
 0x121   :  { %v42_v20 = vpop.xlane.xlu1 %41 }
 0x122   :  { %177 = vrsqrt.f32 %v45_v19  ;;  %v44_v21 = vmul.f32 0.03125, %v42_v20 }
 0x124   :  { %v46_v22 = vadd.f32 1e-05, %v44_v21 }
 0x126   :  { %179 = vrsqrt.f32 %v46_v22 }
 0x12f   :  { %v178_v23 = vpop.eup %177 }
 0x130   :  { %v49_v24 = vmul.f32 %v178_v23, %v33_v6 }
 0x132   :  { %v58_v28 = vmul.f32 %v152_v25, %v49_v24 }
 0x133   :  { %v180_v26 = vpop.eup %179 }
 0x134   :  { %v50_v27 = vmul.f32 %v180_v26, %v34_v10  ;;  %v67_v31 = vadd.f32 %v153_v29, %v58_v28 }
 0x136   :  { %v59_v30 = vmul.f32 %v152_v25, %v50_v27 }
 0x138   :  { %v68_v32 = vadd.f32 %v153_v29, %v59_v30 }
 0x13a   :  { %v69_v33 = vpack.c.bf16 %v68_v32, %v67_v31 }
 0x13c   :  { %170 = vmatmul.mubr.msk.bf16.vlgmr.msra.gmra.mxu0 %vm23_vm0, %v69_v33 }
 0x1fc   :  { %v130_v35 = vpop.f32.mrf.mxu0 }
 0x1fd   :  { %v131_v36 = vadd.f32 %v154_v34, %v130_v35 }
 0x1fe   :  { %v171_v37 = vpop.f32.mrf.mxu0 }
 0x1ff   :  { %v160_v38 = vpack.c.bf16 %v131_v36, %v131_v36 }
 0x200   :  { %v133_v39 = vpop.f32.mrf.mxu0 }
 0x201   :  { %146 = vst.msk [vmem:[%s250_s5] sm:$0xf] %vm145_vm2, %v160_v38  ;;  %v134_v40 = vadd.f32 %v154_v34, %v133_v39 }
 0x202   :  { %v172_v41 = vpop.f32.mrf.mxu0 }
 0x203   :  { %v161_v42 = vpack.c.bf16 %v134_v40, %v134_v40 }
 0x205   :  { %147 = vst.msk [vmem:[%s250_s5 + $0x4] sm:$0xf] %vm145_vm2, %v161_v42 }

// kernel: _lambda_.14
= control target key start
LH: loop header
LB: loop body
LE: loop exit
PB: predicated region body
PF: predicated region fallthrough
CT: control target
= control target key end

     0   :  { %v439_v1 = vmov 0.0   ;;  %vm440_vm0 = vmmov 0   ;;  %vm323_vm1 = vcmask 261120   ;;  %s562_s1 = inlined_call_operand.vmem [shape: bf16[384,32], index: 1, kind: input, shape index: {}]   ;;  %s563_s0 = inlined_call_operand.vmem [shape: bf16[16,384], index: 0, kind: input, shape index: {}]   ;;  %s564_s2 = inlined_call_operand.vmem [shape: f32[1,32], index: 2, kind: input, shape index: {}]   ;;  %s565_s3 = inlined_call_operand.vmem [shape: f32[16,32], index: 3, kind: input, shape index: {}]   ;;  %s566_s4 = inlined_call_operand.vmem [shape: f32[16,32], index: 4, kind: output, shape index: {}]  }
   0x1   :  { %v411_v0 = vld [vmem:[%s562_s1 + $0x78] sm:$0xff]   ;;  %389 = vmatprep.subr.bf16.mxu1 %v439_v1  ;;  %405 = vmatprep.mubr.msk.bf16.mxu1 %vm440_vm0, %v439_v1  ;;  %v414_v4 = vld [vmem:[%s562_s1 + $0x70] sm:$0xff]   ;;  %v417_v7 = vld [vmem:[%s562_s1 + $0x68] sm:$0xff]  }
   0x2   :  { %v412_v2 = vld [vmem:[%s562_s1 + $0x38] sm:$0xff]   ;;  %358 = vmatprep.subr.bf16.mxu0 %v411_v0  ;;  %v415_v5 = vld [vmem:[%s562_s1 + $0x30] sm:$0xff]   ;;  %v418_v8 = vld [vmem:[%s562_s1 + $0x28] sm:$0xff]  }
   0x3   :  { %v413_v3 = vld [vmem:[%s562_s1 + $0xb8] sm:$0xff]   ;;  %359 = vmatpush3.bf16.msra.mxu0 %v412_v2  ;;  %v416_v6 = vld [vmem:[%s562_s1 + $0xb0] sm:$0xff]   ;;  %v419_v9 = vld [vmem:[%s562_s1 + $0xa8] sm:$0xff]  }
   0x4   :  { %390 = vmatpush3.bf16.msra.mxu1 %v413_v3  ;;  %360 = vmatprep.subr.bf16.mxu0 %v414_v4  ;;  %v420_v10 = vld [vmem:[%s562_s1 + $0x60] sm:$0xff]   ;;  %v423_v13 = vld [vmem:[%s562_s1 + $0x58] sm:$0xff]   ;;  %v426_v16 = vld [vmem:[%s562_s1 + $0x50] sm:$0xff]  }
   0x5   :  { %391 = vmatprep.subr.bf16.mxu1 %v439_v1  ;;  %v421_v11 = vld [vmem:[%s562_s1 + $0x20] sm:$0xff]   ;;  %v424_v14 = vld [vmem:[%s562_s1 + $0x18] sm:$0xff]   ;;  %v427_v17 = vld [vmem:[%s562_s1 + $0x10] sm:$0xff]  }
   0x6   :  { %v422_v12 = vld [vmem:[%s562_s1 + $0xa0] sm:$0xff]   ;;  %v425_v15 = vld [vmem:[%s562_s1 + $0x98] sm:$0xff]   ;;  %v428_v18 = vld [vmem:[%s562_s1 + $0x90] sm:$0xff]  }
   0x7   :  { %361 = vmatpush3.bf16.msra.mxu0 %v415_v5  ;;  %v429_v19 = vld [vmem:[%s562_s1 + $0x48] sm:$0xff]   ;;  %v432_v22 = vld [vmem:[%s562_s1 + $0x40] sm:$0xff]  }
   0x8   :  { %392 = vmatpush3.bf16.msra.mxu1 %v416_v6  ;;  %362 = vmatprep.subr.bf16.mxu0 %v417_v7  ;;  %v430_v20 = vld [vmem:[%s562_s1 + $0x8] sm:$0xff]   ;;  %v437_v23 = vld [vmem:[%s563_s0 + $0x4] ss:$12 sps:$4 sm:$0xff]   ;;  %v330_v30 = vld [vmem:[%s564_s2] ss:$0 sm:$0xff] }
   0x9   :  { %393 = vmatprep.subr.bf16.mxu1 %v439_v1  ;;  %v431_v21 = vld [vmem:[%s562_s1 + $0x88] sm:$0xff]   ;;  %v433_v24 = vld [vmem:[%s562_s1] sm:$0xff]   ;;  %269 = vmatprep.mubr.bf16.mxu0 %v437_v23 }
   0xa   :  { %v434_v25 = vld [vmem:[%s562_s1 + $0x80] sm:$0xff]   ;;  %v438_v27 = vld [vmem:[%s563_s0 + $0x8] ss:$12 sps:$4 sm:$0xff]  }
   0xb   :  { %363 = vmatpush3.bf16.msra.mxu0 %v418_v8  ;;  %v435_v26 = vld [vmem:[%s563_s0] ss:$12 sps:$4 sm:$0xff]  }
   0xc   :  { %394 = vmatpush3.bf16.msra.mxu1 %v419_v9  ;;  %364 = vmatprep.subr.bf16.mxu0 %v420_v10  ;;  %v319_v37 = vld [vmem:[%s565_s3] sm:$0xff]  ;;  %v320_v44 = vld [vmem:[%s565_s3 + $0x8] sm:$0xff] }
   0xd   :  { %395 = vmatprep.subr.bf16.mxu1 %v439_v1 }
   0xf   :  { %365 = vmatpush3.bf16.msra.mxu0 %v421_v11 }
  0x10   :  { %396 = vmatpush3.bf16.msra.mxu1 %v422_v12  ;;  %366 = vmatprep.subr.bf16.mxu0 %v423_v13 }
  0x11   :  { %397 = vmatprep.subr.bf16.mxu1 %v439_v1 }
  0x13   :  { %367 = vmatpush3.bf16.msra.mxu0 %v424_v14 }
  0x14   :  { %398 = vmatpush3.bf16.msra.mxu1 %v425_v15  ;;  %368 = vmatprep.subr.bf16.mxu0 %v426_v16 }
  0x15   :  { %399 = vmatprep.subr.bf16.mxu1 %v439_v1 }
  0x17   :  { %369 = vmatpush3.bf16.msra.mxu0 %v427_v17 }
  0x18   :  { %400 = vmatpush3.bf16.msra.mxu1 %v428_v18  ;;  %370 = vmatprep.subr.bf16.mxu0 %v429_v19 }
  0x19   :  { %401 = vmatprep.subr.bf16.mxu1 %v439_v1 }
  0x1b   :  { %371 = vmatpush3.bf16.msra.mxu0 %v430_v20 }
  0x1c   :  { %402 = vmatpush3.bf16.msra.mxu1 %v431_v21  ;;  %372 = vmatprep.subr.bf16.mxu0 %v432_v22 }
  0x1d   :  { %403 = vmatprep.subr.bf16.mxu1 %v439_v1 }
  0x1f   :  { %373 = vmatpush3.bf16.msra.mxu0 %v433_v24 }
  0x20   :  { %404 = vmatpush3.bf16.msra.mxu1 %v434_v25 }
  0x22   :  { %270 = vmatmul.mubr.bf16.vlgmr.msra.gmra.mxu0 %v435_v26 }
  0x23   :  { %406 = vmatmul.mubr.bf16.vlgmr.msra.gmra.mxu1 %v438_v27 }
  0xe2   :  { %v374_v28 = vpop.f32.mrf.mxu0 }
  0xe3   :  { %v312_v29 = vpop.f32.mrf.mxu1 }
  0xe4   :  { %v375_v31 = vpop.f32.mrf.mxu0 }
  0xe5   :  { %v376_v32 = vadd.f32 %v375_v31, %v374_v28  ;;  %v407_v33 = vpop.f32.mrf.mxu1 }
  0xe6   :  { %v377_v34 = vpop.f32.mrf.mxu0 }
  0xe7   :  { %v272_v35 = vadd.f32 %v376_v32, %v330_v30  ;;  %v315_v36 = vpop.f32.mrf.mxu1 }
  0xe8   :  { %v378_v38 = vpop.f32.mrf.mxu0 }
  0xe9   :  { %v313_v39 = vadd.f32 %v312_v29, %v272_v35  ;;  %v379_v40 = vadd.f32 %v378_v38, %v377_v34  ;;  %v408_v41 = vpop.f32.mrf.mxu1 }
  0xeb   :  { %v321_v42 = vadd.f32 %v319_v37, %v313_v39  ;;  %v275_v43 = vadd.f32 %v379_v40, %v330_v30 }
  0xed   :  { %324 = vst.msk [vmem:[%s566_s4] sm:$0xff] %vm323_vm1, %v321_v42  ;;  %v316_v45 = vadd.f32 %v315_v36, %v275_v43 }
  0xef   :  { %v322_v46 = vadd.f32 %v320_v44, %v316_v45 }
  0xf1   :  { %325 = vst.msk [vmem:[%s566_s4 + $0x8] sm:$0xff] %vm323_vm1, %v322_v46 }

// kernel: _lambda_.18
= control target key start
LH: loop header
LB: loop body
LE: loop exit
PB: predicated region body
PF: predicated region fallthrough
CT: control target
= control target key end

     0   :  { %v192_v0 = vmov 0.0   ;;  %vm193_vm0 = vmmov 0   ;;  %vm43_vm1 = vcmask 130048   ;;  %vm156_vm2 = vcmask 261120   ;;  %s256_s3 = inlined_call_operand.vmem [shape: bf16[16,32], index: 3, kind: input, shape index: {}]   ;;  %s257_s1 = inlined_call_operand.vmem [shape: bf16[16,32], index: 1, kind: input, shape index: {}]   ;;  %s258_s2 = inlined_call_operand.vmem [shape: bf16[16,16], index: 2, kind: input, shape index: {}]   ;;  %s259_s0 = inlined_call_operand.vmem [shape: bf16[16,16], index: 0, kind: input, shape index: {}]   ;;  %s260_s4 = inlined_call_operand.vmem [shape: f32[1,32], index: 4, kind: input, shape index: {}]   ;;  %s261_s5 = inlined_call_operand.vmem [shape: f32[16,32], index: 5, kind: input, shape index: {}]   ;;  %s262_s6 = inlined_call_operand.vmem [shape: f32[16,32], index: 6, kind: output, shape index: {}]  }
   0x1   :  { %174 = vmatprep.subr.bf16.mxu0 %v192_v0  ;;  %180 = vmatprep.subr.bf16.mxu1 %v192_v0  ;;  %v188_v1 = vld [vmem:[%s256_s3] sm:$0xff]   ;;  %v153_v18 = vld [vmem:[%s261_s5 + $0x8] sm:$0xff] }
   0x2   :  { %v189_v2 = vld [vmem:[%s257_s1] sm:$0xff]   ;;  %176 = vmatprep.mubr.msk.bf16.mxu0 %vm193_vm0, %v192_v0  ;;  %182 = vmatprep.mubr.msk.bf16.mxu1 %vm193_vm0, %v192_v0 }
   0x3   :  { %175 = vmatpush3.bf16.msra.mxu0 %v188_v1  ;;  %v190_v3 = vld [vmem:[%s258_s2] sm:$0xff]   ;;  %181 = vmatpush3.bf16.msra.mxu1 %v189_v2 }
   0x4   :  { %v191_v4 = vld [vmem:[%s259_s0] sm:$0xff]  }
   0x5   :  { %v169_v7 = vld [vmem:[%s260_s4] ss:$0 sm:$0xff] }
   0x6   :  { %177 = vmatmul.mubr.msk.bf16.vlgmr.msra.gmra.mxu0 %vm43_vm1, %v190_v3  ;;  %183 = vmatmul.mubr.msk.bf16.vlgmr.msra.gmra.mxu1 %vm43_vm1, %v191_v4  ;;  %v152_v10 = vld [vmem:[%s261_s5] sm:$0xff] }
  0xc6   :  { %v81_v5 = vpop.f32.mrf.mxu0  ;;  %v136_v6 = vpop.f32.mrf.mxu1 }
  0xc7   :  { %v137_v8 = vadd.f32 %v136_v6, %v81_v5 }
  0xc8   :  { %v178_v9 = vpop.f32.mrf.mxu0  ;;  %v184_v11 = vpop.f32.mrf.mxu1 }
  0xc9   :  { %v150_v12 = vadd.f32 %v169_v7, %v137_v8 }
  0xca   :  { %v84_v13 = vpop.f32.mrf.mxu0  ;;  %v139_v14 = vpop.f32.mrf.mxu1 }
  0xcb   :  { %v154_v15 = vadd.f32 %v152_v10, %v150_v12  ;;  %v140_v16 = vadd.f32 %v139_v14, %v84_v13 }
  0xcc   :  { %v179_v17 = vpop.f32.mrf.mxu0  ;;  %v185_v19 = vpop.f32.mrf.mxu1 }
  0xcd   :  { %157 = vst.msk [vmem:[%s262_s6] sm:$0xff] %vm156_vm2, %v154_v15  ;;  %v151_v20 = vadd.f32 %v169_v7, %v140_v16 }
  0xcf   :  { %v155_v21 = vadd.f32 %v153_v18, %v151_v20 }
  0xd1   :  { %158 = vst.msk [vmem:[%s262_s6 + $0x8] sm:$0xff] %vm156_vm2, %v155_v21 }

// kernel: _lambda_.17
= control target key start
LH: loop header
LB: loop body
LE: loop exit
PB: predicated region body
PF: predicated region fallthrough
CT: control target
= control target key end

     0   :  { %s1677_s12 = smov 0   ;;  %s1916_s0 = inlined_call_operand.vmem [shape: bf16[8,2,16], index: 0, kind: input, shape index: {}]   ;;  %s1917_s1 = inlined_call_operand.vmem [shape: bf16[8,2,16], index: 1, kind: input, shape index: {}]   ;;  %s1918_s2 = inlined_call_operand.vmem [shape: bf16[8,2,16], index: 2, kind: input, shape index: {}]   ;;  %s1919_s3 = inlined_call_operand.vmem [shape: bf16[8,2,16], index: 3, kind: output, shape index: {}]  }
   0x1 LB: > { %s1436_s13 = sadd.s32 4294967295, %s1650_s12   ;;  %p1440_p0 = scmp.ge.s32.totalorder %s1650_s12, 1  ;;  %s1650_s12 = sphi %s1677_s12, %s13_s12  }
   0x2   : > { %p157_p1 = scmp.lt.s32.totalorder %s1650_s12, 3 }
   0x4   : > { %p158_p2 = pnand %p1440_p0, %p157_p1 }
   0x5   : > { %s1441_s14 = sshll.u32 (!%p158_p2), %s1436_s13, 2  ;;  %s1655_s21 = smov (!%p158_p2), 120  }
   0x6   : > { %161 = sbr.rel (%p158_p2) target bundleno = 1071 (0x42f), region = 32  ;;  %p188_p3 = scmp.lt.s32.totalorder (!%p158_p2), %s1441_s14, 7 }
   0x7   : > { %s1656_s28 = smov (!%p158_p2), 8  }
   0xb   : > { %v1652_v0 = vmov 0.0   ;;  %v1653_v1 = vmov 1966171168   ;;  %v674_v3 = vlaneseq  ;;  %vm1654_vm0 = vmmov 0   ;;  %s1921_s14 = smov (!%p188_p3, %s1441_s14), 7 }
   0xc   : > { %1503 = vmatprep.subr.bf16.mxu0 %v1652_v0  ;;  %1509 = vmatprep.subr.bf16.mxu1 %v1652_v0  ;;  %v672_v2 = vunpack.c.l.s4 %v1653_v1  ;;  %vm225_vm1 = vcmask 64512   ;;  %s1697_s17 = scalar_lea.vmem %s1917_s1, %s1921_s14  ;;  %s1703_s20 = scalar_lea.vmem %s1916_s0, %s1921_s14  ;;  %vm410_vm2 = vcmask 9216   ;;  %vm455_vm3 = vcmask 1040384  }
   0xd   : > { %1505 = vmatprep.mubr.msk.bf16.mxu0 %vm1654_vm0, %v1652_v0  ;;  %1511 = vmatprep.mubr.msk.bf16.mxu1 %vm1654_vm0, %v1652_v0  ;;  %v675_v5 = vshrl.u32 %v674_v3, 7  ;;  %v217_v6 = vld [vmem:[%s1697_s17] sm:$0x1]  ;;  %v218_v7 = vld [vmem:[%s1697_s17 + $0x1] sm:$0x1]  ;;  %s1760_s24 = scalar_lea.vmem %s1918_s2, %s1921_s14  ;;  %vm451_vm4 = vcmask 15360   ;;  %s1893_s27 = scalar_lea.vmem %s1919_s3, %s1921_s14 }
   0xe   : > { %v673_v4 = vunpack.c.0.s8 %v672_v2  ;;  %v209_v8 = vld [vmem:[%s1703_s20] sm:$0x1]  ;;  %v230_v9 = vsel %vm225_vm1, %v217_v6, 0  ;;  %v276_v10 = vsel %vm225_vm1, %v218_v7, 0  ;;  %v210_v11 = vld [vmem:[%s1703_s20 + $0x1] sm:$0x1] }
   0xf   : > { %1504 = vmatpush3.bf16.xpose.msra.mxu0 %v230_v9  ;;  %1510 = vmatpush3.bf16.xpose.msra.mxu1 %v276_v10  ;;  %v213_v13 = vmul.bf16 1052065461, %v209_v8  ;;  %v214_v14 = vmul.bf16 1052065461, %v210_v11  ;;  %v219_v15 = vld [vmem:[%s1697_s17 + $0x2] sm:$0x1] }
  0x10   : > { %v1711_v12 = vsub.s32 %v673_v4, %v675_v5  ;;  %1515 = vmatprep.subr.bf16.mxu0 %v1652_v0  ;;  %1521 = vmatprep.subr.bf16.mxu1 %v1652_v0  ;;  %v220_v16 = vld [vmem:[%s1697_s17 + $0x3] sm:$0x1]  ;;  %v654_v17 = vld [vmem:[%s1703_s20] sm:$0x1]  ;;  %v322_v21 = vsel %vm225_vm1, %v219_v15, 0  ;;  %vm649_vm5 = vcmask 57344  }
  0x11   : > { %v1455_v18 = vld.sshfl [vmem:[%s1697_s17 + $0x1] sm:$0x1 pattern:$0x75316420]  ;;  %v658_v19 = vmul.bf16 1052065461, %v654_v17 }
  0x12   : > { %v781_v20 = vrot.slane %v1455_v18, %v1711_v12  ;;  %v368_v22 = vsel %vm225_vm1, %v220_v16, 0  ;;  %v211_v25 = vld [vmem:[%s1703_s20 + $0x2] sm:$0x1]  ;;  %v212_v26 = vld [vmem:[%s1703_s20 + $0x3] sm:$0x1]  ;;  %vm1366_vm6 = vcmask 122944  }
  0x13   : > { %v677_v23 = vrot.slane %v658_v19, %v1711_v12  ;;  %v215_v27 = vmul.bf16 1052065461, %v211_v25  ;;  %v216_v28 = vmul.bf16 1052065461, %v212_v26  ;;  %v655_v49 = vld [vmem:[%s1703_s20 + $0x1] sm:$0x1] }
  0x14   : > { %782 = vrot.lane.b32.xlu1 %v781_v20, %s1655_s21  ;;  %v659_v50 = vmul.bf16 1052065461, %v655_v49  ;;  %v1453_v51 = vld.sshfl [vmem:[%s1697_s17] sm:$0x1 pattern:$0x75316420] }
  0x15   : > { %v684_v24 = vrot.slane %v677_v23, %v1711_v12  ;;  %v656_v52 = vld [vmem:[%s1703_s20 + $0x2] sm:$0x1]  ;;  %v701_v54 = vrot.slane %v1453_v51, %v1711_v12  ;;  %v657_v57 = vld [vmem:[%s1703_s20 + $0x3] sm:$0x1]  ;;  %v221_v60 = vld [vmem:[%s1760_s24] sm:$0x1] }
  0x16   : > { %1506 = vmatmul.mubr.msk.bf16.vlgmr.msra.gmra.mxu0 %vm225_vm1, %v213_v13  ;;  %1512 = vmatmul.mubr.msk.bf16.vlgmr.msra.gmra.mxu1 %vm225_vm1, %v214_v14  ;;  %v1457_v53 = vld.sshfl [vmem:[%s1697_s17 + $0x2] sm:$0x1 pattern:$0x75316420]  ;;  %v757_v55 = vrot.slane %v659_v50, %v1711_v12  ;;  %v660_v56 = vmul.bf16 1052065461, %v656_v52 }
  0x17   : > { %1516 = vmatpush3.bf16.xpose.msra.mxu0 %v322_v21  ;;  %1522 = vmatpush3.bf16.xpose.msra.mxu1 %v368_v22  ;;  %v861_v58 = vrot.slane %v1457_v53, %v1711_v12  ;;  %v661_v59 = vmul.bf16 1052065461, %v657_v57  ;;  %v1459_v62 = vld.sshfl [vmem:[%s1697_s17 + $0x3] sm:$0x1 pattern:$0x75316420] }
  0x18   : > { %1517 = vmatprep.mubr.msk.bf16.mxu0 %vm1654_vm0, %v1652_v0  ;;  %1523 = vmatprep.mubr.msk.bf16.mxu1 %vm1654_vm0, %v1652_v0  ;;  %v764_v61 = vrot.slane %v757_v55, %v1711_v12  ;;  %v837_v63 = vrot.slane %v660_v56, %v1711_v12  ;;  %v457_v1 = vsel %vm455_vm3, %v221_v60, 0  ;;  %v941_v2 = vrot.slane %v1459_v62, %v1711_v12  ;;  %v222_v4 = vld [vmem:[%s1760_s24 + $0x1] sm:$0x1]  ;;  %v223_v23 = vld [vmem:[%s1760_s24 + $0x2] sm:$0x1] }
  0x19   : > { %685 = vrot.lane.b32.xlu1 %v684_v24, %s1655_s21  ;;  %1527 = vmatprep.subr.bf16.mxu0 %v1652_v0  ;;  %v917_v3 = vrot.slane %v661_v59, %v1711_v12  ;;  %v503_v6 = vsel %vm455_vm3, %v222_v4, 0  ;;  %v549_v26 = vsel %vm455_vm3, %v223_v23, 0  ;;  %v1467_v23 = vld.sshfl [vmem:[%s1760_s24 + $0x3] sm:$0x1 pattern:$0x75316420] }
  0x1a   : > { %1533 = vmatprep.subr.bf16.mxu1 %v1652_v0  ;;  %v844_v5 = vrot.slane %v837_v63, %v1711_v12 }
  0x1b   : > { %v924_v7 = vrot.slane %v917_v3, %v1711_v12 }
  0x1e   : > { %1518 = vmatmul.mubr.msk.bf16.vlgmr.msra.gmra.mxu0 %vm225_vm1, %v215_v27  ;;  %1524 = vmatmul.mubr.msk.bf16.vlgmr.msra.gmra.mxu1 %vm225_vm1, %v216_v28  ;;  %v224_v27 = vld [vmem:[%s1760_s24 + $0x3] sm:$0x1] }
  0x1f   : > { %1529 = vmatprep.mubr.msk.bf16.mxu0 %vm1654_vm0, %v1652_v0  ;;  %1535 = vmatprep.mubr.msk.bf16.mxu1 %vm1654_vm0, %v1652_v0 }
  0x20   : > { %1528 = vmatpush3.bf16.msra.mxu0 %v457_v1  ;;  %1534 = vmatpush3.bf16.msra.mxu1 %v503_v6 }
  0x21   : > { %1539 = vmatprep.subr.bf16.mxu0 %v1652_v0  ;;  %1545 = vmatprep.subr.bf16.mxu1 %v1652_v0 }
  0x86   : > { %v783_v8 = vpop.permute.xlu1 %782 }
  0x8b   : > { %v686_v13 = vpop.permute.xlu1 %685 }
  0xd6   : > { %v266_v29 = vpop.f32.mrf.mxu0  ;;  %v1742_v30 = vpop.f32.mrf.mxu1 }
  0xd7   : > { %v411_v31 = vsel %vm410_vm2, %v266_v29, -inf  ;;  %v414_v34 = vsel %vm410_vm2, %v1742_v30, -inf }
  0xd8   : > { %v1513_v32 = vpop.f32.mrf.mxu1  ;;  %412 = vmax.xlane.f32.xlu0 %v411_v31  ;;  %v1507_v33 = vpop.f32.mrf.mxu0 }
  0xda   : > { %v269_v35 = vpop.f32.mrf.mxu0  ;;  %v315_v36 = vpop.f32.mrf.mxu1 }
  0xdc   : > { %v1514_v37 = vpop.f32.mrf.mxu1  ;;  %415 = vmax.xlane.f32.xlu0 %v414_v34  ;;  %v1508_v38 = vpop.f32.mrf.mxu0 }
  0xdd   : > { %v788_v38 = vsel %vm225_vm1, %v783_v8, 0 }
  0xde   : > { %v358_v39 = vpop.f32.mrf.mxu0  ;;  %v404_v40 = vpop.f32.mrf.mxu1 }
  0xdf   : > { %v417_v41 = vsel %vm410_vm2, %v358_v39, -inf  ;;  %v420_v44 = vsel %vm410_vm2, %v404_v40, -inf }
  0xe0   : > { %v1525_v42 = vpop.f32.mrf.mxu1  ;;  %418 = vmax.xlane.f32.xlu1 %v417_v41  ;;  %v1519_v43 = vpop.f32.mrf.mxu0 }
  0xe2   : > { %v361_v45 = vpop.f32.mrf.mxu0  ;;  %v407_v46 = vpop.f32.mrf.mxu1 }
  0xe4   : > { %v1526_v47 = vpop.f32.mrf.mxu1  ;;  %421 = vmax.xlane.f32.xlu1 %v420_v44  ;;  %v1520_v48 = vpop.f32.mrf.mxu0 }
  0xf2   : > { %702 = vrot.lane.b32.xlu0 %v701_v54, %s1655_s21 }
  0xf5   : > { %862 = vrot.lane.b32.xlu1 %v861_v58, %s1655_s21 }
  0xf6   : > { %765 = vrot.lane.b32.xlu0 %v764_v61, %s1655_s21 }
  0xf9   : > { %942 = vrot.lane.b32.xlu1 %v941_v2, %s1655_s21 }
  0xfa   : > { %845 = vrot.lane.b32.xlu0 %v844_v5, %s1655_s21 }
  0xfd   : > { %925 = vrot.lane.b32.xlu1 %v924_v7, %s1655_s21 }
 0x161   : > { %v413_v9 = vpop.xlane.xlu0 %412 }
 0x162   : > { %v423_v10 = vsub.f32 %v266_v29, %v413_v9 }
 0x164   : > { %v427_v11 = vmul.f32 1.442695, %v423_v10 }
 0x165   : > { %v416_v14 = vpop.xlane.xlu0 %415 }
 0x166   : > { %1612 = vpow2.f32 %v427_v11  ;;  %v424_v15 = vsub.f32 %v1742_v30, %v416_v14  ;;  %v595_v30 = vsel %vm455_vm3, %v224_v27, 0 }
 0x168   : > { %v429_v16 = vmul.f32 1.442695, %v424_v15 }
 0x169   : > { %v419_v17 = vpop.xlane.xlu1 %418  ;;  %v703_v31 = vpop.permute.xlu0 %702 }
 0x16a   : > { %1614 = vpow2.f32 %v429_v16  ;;  %v425_v18 = vsub.f32 %v358_v39, %v419_v17  ;;  %v708_v33 = vsel %vm225_vm1, %v703_v31, 0 }
 0x16c   : > { %v431_v19 = vmul.f32 1.442695, %v425_v18  ;;  %v1463_v18 = vld.sshfl [vmem:[%s1760_s24 + $0x1] sm:$0x1 pattern:$0x75316420] }
 0x16d   : > { %v422_v20 = vpop.xlane.xlu1 %421 }
 0x16e   : > { %1616 = vpow2.f32 %v431_v19  ;;  %v426_v21 = vsub.f32 %v404_v40, %v422_v20  ;;  %v766_v40 = vpop.permute.xlu0 %765  ;;  %v1107_v20 = vrot.slane %v1463_v18, %v1711_v12 }
 0x170   : > { %v433_v22 = vmul.f32 1.442695, %v426_v21  ;;  %v1465_v21 = vld.sshfl [vmem:[%s1760_s24 + $0x2] sm:$0x1 pattern:$0x75316420] }
 0x171   : > { %v863_v36 = vpop.permute.xlu1 %862 }
 0x172   : > { %1618 = vpow2.f32 %v433_v22  ;;  %v868_v39 = vsel %vm225_vm1, %v863_v36, 0  ;;  %v846_v43 = vpop.permute.xlu0 %845  ;;  %v1170_v22 = vrot.slane %v1465_v21, %v1711_v12 }
 0x173   : > { %v1784_v24 = vpop.eup %1612 }
 0x174   : > { %v447_v25 = vpack.c.bf16 %v1784_v24, %v1784_v24 }
 0x175   : > { %v943_v41 = vpop.permute.xlu1 %942 }
 0x176   : > { %1530 = vmatmul.mubr.msk.bf16.vlgmr.msra.gmra.mxu0 %vm451_vm4, %v447_v25  ;;  %v948_v42 = vsel %vm225_vm1, %v943_v41, 0  ;;  %v1233_v25 = vrot.slane %v1467_v23, %v1711_v12 }
 0x177   : > { %v1791_v28 = vpop.eup %1614  ;;  %1540 = vmatpush3.bf16.msra.mxu0 %v549_v26  ;;  %1541 = vmatprep.mubr.msk.bf16.mxu0 %vm1654_vm0, %v1652_v0  ;;  %v1461_v26 = vld.sshfl [vmem:[%s1760_s24] sm:$0x1 pattern:$0x75316420] }
 0x178   : > { %v448_v29 = vpack.c.bf16 %v1791_v28, %v1791_v28  ;;  %1551 = vmatprep.subr.bf16.mxu0 %v1652_v0  ;;  %v1044_v27 = vrot.slane %v1461_v26, %v1711_v12 }
 0x179   : > { %v926_v44 = vpop.permute.xlu1 %925 }
 0x17a   : > { %1536 = vmatmul.mubr.msk.bf16.vlgmr.msra.gmra.mxu1 %vm451_vm4, %v448_v29 }
 0x17b   : > { %v1800_v32 = vpop.eup %1616  ;;  %1546 = vmatpush3.bf16.msra.mxu1 %v595_v30  ;;  %1547 = vmatprep.mubr.msk.bf16.mxu1 %vm1654_vm0, %v1652_v0 }
 0x17c   : > { %v449_v34 = vpack.c.bf16 %v1800_v32, %v1800_v32  ;;  %1557 = vmatprep.subr.bf16.mxu1 %v1652_v0 }
 0x17e   : > { %1542 = vmatmul.mubr.msk.bf16.vlgmr.msra.gmra.mxu0 %vm451_vm4, %v449_v34 }
 0x17f   : > { %v1809_v35 = vpop.eup %1618  ;;  %1552 = vmatpush3.bf16.xpose.msra.mxu0 %v708_v33  ;;  %1553 = vmatprep.mubr.msk.bf16.mxu0 %vm1654_vm0, %v1652_v0 }
 0x180   : > { %v450_v37 = vpack.c.bf16 %v1809_v35, %v1809_v35  ;;  %1563 = vmatprep.subr.bf16.mxu0 %v1652_v0 }
 0x182   : > { %1548 = vmatmul.mubr.msk.bf16.vlgmr.msra.gmra.mxu1 %vm451_vm4, %v450_v37 }
 0x183   : > { %1558 = vmatpush3.bf16.xpose.msra.mxu1 %v788_v38  ;;  %1559 = vmatprep.mubr.msk.bf16.mxu1 %vm1654_vm0, %v1652_v0 }
 0x184   : > { %1569 = vmatprep.subr.bf16.mxu1 %v1652_v0 }
 0x186   : > { %1554 = vmatmul.mubr.msk.bf16.vlgmr.msra.gmra.mxu0 %vm225_vm1, %v686_v13 }
 0x187   : > { %1564 = vmatpush3.bf16.xpose.msra.mxu0 %v868_v39  ;;  %1565 = vmatprep.mubr.msk.bf16.mxu0 %vm1654_vm0, %v1652_v0 }
 0x188   : > { %1575 = vmatprep.subr.bf16.mxu0 %v1652_v0 }
 0x18a   : > { %1560 = vmatmul.mubr.msk.bf16.vlgmr.msra.gmra.mxu1 %vm225_vm1, %v766_v40 }
 0x18b   : > { %1570 = vmatpush3.bf16.xpose.msra.mxu1 %v948_v42  ;;  %1571 = vmatprep.mubr.msk.bf16.mxu1 %vm1654_vm0, %v1652_v0 }
 0x18c   : > { %1581 = vmatprep.subr.bf16.mxu1 %v1652_v0 }
 0x18e   : > { %1566 = vmatmul.mubr.msk.bf16.vlgmr.msra.gmra.mxu0 %vm225_vm1, %v846_v43 }
 0x18f   : > { %1577 = vmatprep.mubr.msk.bf16.mxu0 %vm1654_vm0, %v1652_v0 }
 0x192   : > { %1572 = vmatmul.mubr.msk.bf16.vlgmr.msra.gmra.mxu1 %vm225_vm1, %v926_v44 }
 0x193   : > { %1583 = vmatprep.mubr.msk.bf16.mxu1 %vm1654_vm0, %v1652_v0 }
 0x236   : > { %v1837_v45 = vpop.f32.mrf.mxu0 }
 0x238   : > { %v1531_v46 = vpop.f32.mrf.mxu0 }
 0x23a   : > { %v496_v47 = vpop.f32.mrf.mxu0  ;;  %v1839_v48 = vpop.f32.mrf.mxu1 }
 0x23c   : > { %v1532_v49 = vpop.f32.mrf.mxu0  ;;  %v1537_v50 = vpop.f32.mrf.mxu1 }
 0x23e   : > { %v542_v51 = vpop.f32.mrf.mxu1  ;;  %v1841_v52 = vpop.f32.mrf.mxu0 }
 0x240   : > { %v1538_v53 = vpop.f32.mrf.mxu1  ;;  %v1543_v54 = vpop.f32.mrf.mxu0 }
 0x242   : > { %v588_v55 = vpop.f32.mrf.mxu0  ;;  %v1843_v56 = vpop.f32.mrf.mxu1 }
 0x244   : > { %v1544_v57 = vpop.f32.mrf.mxu0  ;;  %v1549_v58 = vpop.f32.mrf.mxu1 }
 0x246   : > { %v634_v59 = vpop.f32.mrf.mxu1  ;;  %v744_v60 = vpop.f32.mrf.mxu0 }
 0x247   : > { %v990_v61 = vsel %vm410_vm2, %v744_v60, -inf }
 0x248   : > { %v1550_v62 = vpop.f32.mrf.mxu1  ;;  %991 = vmax.xlane.f32.xlu0 %v990_v61  ;;  %v1555_v63 = vpop.f32.mrf.mxu0 }
 0x249   : > { %v438_v62 = vsel %vm410_vm2, %v1791_v28, 0.0  ;;  %v441_v28 = vsel %vm410_vm2, %v1800_v32, 0.0 }
 0x24a   : > { %v747_v1 = vpop.f32.mrf.mxu0  ;;  %v824_v2 = vpop.f32.mrf.mxu1 }
 0x24b   : > { %v993_v3 = vsel %vm410_vm2, %v824_v2, -inf }
 0x24c   : > { %994 = vmax.xlane.f32.xlu1 %v993_v3  ;;  %v1556_v4 = vpop.f32.mrf.mxu0  ;;  %v1561_v5 = vpop.f32.mrf.mxu1  ;;  %v444_v3 = vsel %vm410_vm2, %v1809_v35, 0.0 }
 0x24e   : > { %v827_v6 = vpop.f32.mrf.mxu1  ;;  %v904_v7 = vpop.f32.mrf.mxu0 }
 0x24f   : > { %v996_v8 = vsel %vm410_vm2, %v904_v7, -inf }
 0x250   : > { %v1562_v9 = vpop.f32.mrf.mxu1  ;;  %997 = vmax.xlane.f32.xlu0 %v996_v8  ;;  %v1567_v10 = vpop.f32.mrf.mxu0 }
 0x252   : > { %v907_v11 = vpop.f32.mrf.mxu0  ;;  %v984_v13 = vpop.f32.mrf.mxu1 }
 0x253   : > { %v999_v14 = vsel %vm410_vm2, %v984_v13, -inf }
 0x254   : > { %v1573_v15 = vpop.f32.mrf.mxu1  ;;  %1000 = vmax.xlane.f32.xlu0 %v999_v14  ;;  %v1568_v16 = vpop.f32.mrf.mxu0 }
 0x256   : > { %v987_v17 = vpop.f32.mrf.mxu1 }
 0x258   : > { %v1574_v19 = vpop.f32.mrf.mxu1 }
 0x25d   : > { %1108 = vrot.lane.b32.xlu1 %v1107_v20, %s1655_s21 }
 0x261   : > { %1171 = vrot.lane.b32.xlu1 %v1170_v22, %s1655_s21 }
 0x265   : > { %1234 = vrot.lane.b32.xlu1 %v1233_v25, %s1655_s21 }
 0x26a   : > { %1045 = vrot.lane.b32.xlu0 %v1044_v27, %s1655_s21 }
 0x2d1   : > { %v992_v29 = vpop.xlane.xlu0 %991 }
 0x2d2   : > { %v1002_v30 = vsub.f32 %v744_v60, %v992_v29 }
 0x2d4   : > { %v1006_v31 = vmul.f32 1.442695, %v1002_v30 }
 0x2d5   : > { %v995_v33 = vpop.xlane.xlu1 %994 }
 0x2d6   : > { %1620 = vpow2.f32 %v1006_v31  ;;  %v1003_v34 = vsub.f32 %v824_v2, %v995_v33 }
 0x2d8   : > { %v1008_v36 = vmul.f32 1.442695, %v1003_v34 }
 0x2d9   : > { %v998_v37 = vpop.xlane.xlu0 %997  ;;  %v1109_v38 = vpop.permute.xlu1 %1108 }
 0x2da   : > { %1622 = vpow2.f32 %v1008_v36  ;;  %v1004_v39 = vsub.f32 %v904_v7, %v998_v37  ;;  %v1114_v40 = vsel %vm455_vm3, %v1109_v38, 0 }
 0x2db   : > { %1582 = vmatpush3.bf16.msra.mxu1 %v1114_v40 }
 0x2dc   : > { %v1010_v41 = vmul.f32 1.442695, %v1004_v39  ;;  %1593 = vmatprep.subr.bf16.mxu1 %v1652_v0 }
 0x2dd   : > { %v1001_v42 = vpop.xlane.xlu0 %1000  ;;  %v1172_v44 = vpop.permute.xlu1 %1171 }
 0x2de   : > { %1624 = vpow2.f32 %v1010_v41  ;;  %v1005_v43 = vsub.f32 %v984_v13, %v1001_v42  ;;  %v1177_v54 = vsel %vm455_vm3, %v1172_v44, 0 }
 0x2e0   : > { %v1012_v46 = vmul.f32 1.442695, %v1005_v43 }
 0x2e1   : > { %v1046_v47 = vpop.permute.xlu0 %1045  ;;  %v1235_v55 = vpop.permute.xlu1 %1234 }
 0x2e2   : > { %1626 = vpow2.f32 %v1012_v46  ;;  %v1051_v49 = vsel %vm455_vm3, %v1046_v47, 0  ;;  %v1240_v60 = vsel %vm455_vm3, %v1235_v55, 0 }
 0x2e3   : > { %v1621_v50 = vpop.eup %1620  ;;  %1576 = vmatpush3.bf16.msra.mxu0 %v1051_v49 }
 0x2e4   : > { %v1014_v51 = vsel %vm410_vm2, %v1621_v50, 0.0  ;;  %v1026_v53 = vpack.c.bf16 %v1621_v50, %v1621_v50  ;;  %1587 = vmatprep.subr.bf16.mxu0 %v1652_v0 }
 0x2e5   : > { %1015 = vadd.xlane.f32.xlu0 %v1014_v51 }
 0x2e6   : > { %1578 = vmatmul.mubr.msk.bf16.vlgmr.msra.gmra.mxu0 %vm451_vm4, %v1026_v53 }
 0x2e7   : > { %v1623_v57 = vpop.eup %1622  ;;  %1588 = vmatpush3.bf16.msra.mxu0 %v1177_v54  ;;  %1589 = vmatprep.mubr.msk.bf16.mxu0 %vm1654_vm0, %v1652_v0 }
 0x2e8   : > { %v1017_v58 = vsel %vm410_vm2, %v1623_v57, 0.0  ;;  %v1027_v59 = vpack.c.bf16 %v1623_v57, %v1623_v57 }
 0x2e9   : > { %1018 = vadd.xlane.f32.xlu1 %v1017_v58 }
 0x2ea   : > { %1584 = vmatmul.mubr.msk.bf16.vlgmr.msra.gmra.mxu1 %vm451_vm4, %v1027_v59 }
 0x2eb   : > { %v1625_v61 = vpop.eup %1624  ;;  %1594 = vmatpush3.bf16.msra.mxu1 %v1240_v60  ;;  %1595 = vmatprep.mubr.msk.bf16.mxu1 %vm1654_vm0, %v1652_v0  ;;  %v435_v0 = vsel %vm410_vm2, %v1784_v24, 0.0 }
 0x2ec   : > { %v1020_v63 = vsel %vm410_vm2, %v1625_v61, 0.0  ;;  %v1028_v1 = vpack.c.bf16 %v1625_v61, %v1625_v61 }
 0x2ed   : > { %439 = vadd.xlane.f32.xlu1 %v438_v62  ;;  %1021 = vadd.xlane.f32.xlu0 %v1020_v63 }
 0x2ee   : > { %1590 = vmatmul.mubr.msk.bf16.vlgmr.msra.gmra.mxu0 %vm451_vm4, %v1028_v1 }
 0x2ef   : > { %v1627_v2 = vpop.eup %1626 }
 0x2f0   : > { %v1023_v4 = vsel %vm410_vm2, %v1627_v2, 0.0  ;;  %v1029_v5 = vpack.c.bf16 %v1627_v2, %v1627_v2 }
 0x2f1   : > { %445 = vadd.xlane.f32.xlu1 %v444_v3  ;;  %1024 = vadd.xlane.f32.xlu0 %v1023_v4 }
 0x2f2   : > { %1596 = vmatmul.mubr.msk.bf16.vlgmr.msra.gmra.mxu1 %vm451_vm4, %v1029_v5 }
 0x2f5   : > { %436 = vadd.xlane.f32.xlu0 %v435_v0 }
 0x2f9   : > { %442 = vadd.xlane.f32.xlu0 %v441_v28 }
 0x36e   : > { %v1016_v6 = vpop.xlane.xlu0 %1015 }
 0x372   : > { %v1019_v7 = vpop.xlane.xlu1 %1018 }
 0x376   : > { %v1022_v8 = vpop.xlane.xlu0 %1021  ;;  %v440_v35 = vpop.xlane.xlu1 %439 }
 0x377   : > { %1628 = vrcp.f32 %v440_v35 }
 0x37a   : > { %v1025_v9 = vpop.xlane.xlu0 %1024  ;;  %v446_v10 = vpop.xlane.xlu1 %445 }
 0x37e   : > { %v437_v11 = vpop.xlane.xlu0 %436 }
 0x37f   : > { %1630 = vrcp.f32 %v437_v11 }
 0x380   : > { %1632 = vrcp.f32 %v446_v10 }
 0x382   : > { %v443_v13 = vpop.xlane.xlu0 %442 }
 0x383   : > { %1634 = vrcp.f32 %v443_v13 }
 0x384   : > { %v1629_v14 = vpop.eup %1628  ;;  %1636 = vrcp.f32 %v1016_v6 }
 0x385   : > { %v642_v15 = vmul.f32 %v1629_v14, %v1839_v48  ;;  %1638 = vrcp.f32 %v1019_v7 }
 0x386   : > { %1640 = vrcp.f32 %v1022_v8 }
 0x387   : > { %v646_v19 = vpack.c.bf16 %v642_v15, %v642_v15  ;;  %1642 = vrcp.f32 %v1025_v9 }
 0x389   : > { %651 = vst.msk [vmem:[%s1893_s27 + $0x1] sm:$0x1] %vm649_vm5, %v646_v19 }
 0x38c   : > { %v1631_v24 = vpop.eup %1630 }
 0x38d   : > { %v1633_v16 = vpop.eup %1632  ;;  %v641_v32 = vmul.f32 %v1631_v24, %v1837_v45 }
 0x38e   : > { %v644_v20 = vmul.f32 %v1633_v16, %v1843_v56 }
 0x38f   : > { %v645_v17 = vpack.c.bf16 %v641_v32, %v641_v32 }
 0x390   : > { %v1635_v18 = vpop.eup %1634  ;;  %v648_v21 = vpack.c.bf16 %v644_v20, %v644_v20 }
 0x391   : > { %650 = vst.msk [vmem:[%s1893_s27] sm:$0x1] %vm649_vm5, %v645_v17  ;;  %v643_v48 = vmul.f32 %v1635_v18, %v1841_v52  ;;  %v1637_v22 = vpop.eup %1636 }
 0x392   : > { %653 = vst.msk [vmem:[%s1893_s27 + $0x3] sm:$0x1] %vm649_vm5, %v648_v21  ;;  %v1639_v29 = vpop.eup %1638 }
 0x393   : > { %v647_v45 = vpack.c.bf16 %v643_v48, %v643_v48  ;;  %v1641_v38 = vpop.eup %1640 }
 0x394   : > { %v1643_v49 = vpop.eup %1642 }
 0x395   : > { %652 = vst.msk [vmem:[%s1893_s27 + $0x2] sm:$0x1] %vm649_vm5, %v647_v45 }
 0x3a6   : > { %v1087_v23 = vpop.f32.mrf.mxu0 }
 0x3a7   : > { %v1286_v25 = vmul.f32 %v1637_v22, %v1087_v23 }
 0x3a8   : > { %v1579_v26 = vpop.f32.mrf.mxu0 }
 0x3a9   : > { %v1290_v27 = vpack.c.bf16 %v1286_v25, %v1286_v25 }
 0x3aa   : > { %v1090_v30 = vpop.f32.mrf.mxu0  ;;  %v1150_v56 = vpop.f32.mrf.mxu1 }
 0x3ab   : > { %v1304_v31 = vrot.slane %v1290_v27, %v1711_v12  ;;  %v1287_v52 = vmul.f32 %v1639_v29, %v1150_v56 }
 0x3ac   : > { %v1580_v33 = vpop.f32.mrf.mxu0  ;;  %v1585_v34 = vpop.f32.mrf.mxu1 }
 0x3ad   : > { %v1291_v36 = vpack.c.bf16 %v1287_v52, %v1287_v52  ;;  %v1311_v37 = vrot.slane %v1304_v31, %v1711_v12 }
 0x3ae   : > { %v1153_v39 = vpop.f32.mrf.mxu1  ;;  %v1213_v40 = vpop.f32.mrf.mxu0 }
 0x3af   : > { %v1318_v41 = vrot.slane %v1291_v36, %v1711_v12  ;;  %v1288_v42 = vmul.f32 %v1641_v38, %v1213_v40  ;;  %1354 = vrot.lane.b32.xlu0 %v1311_v37, %s1656_s28 }
 0x3b0   : > { %v1586_v43 = vpop.f32.mrf.mxu1  ;;  %v1591_v44 = vpop.f32.mrf.mxu0 }
 0x3b1   : > { %v1292_v46 = vpack.c.bf16 %v1288_v42, %v1288_v42  ;;  %v1325_v47 = vrot.slane %v1318_v41, %v1711_v12 }
 0x3b2   : > { %v1216_v50 = vpop.f32.mrf.mxu0  ;;  %v1276_v51 = vpop.f32.mrf.mxu1 }
 0x3b3   : > { %v1332_v53 = vrot.slane %v1292_v46, %v1711_v12  ;;  %v1289_v54 = vmul.f32 %v1643_v49, %v1276_v51  ;;  %1356 = vrot.lane.b32.xlu1 %v1325_v47, %s1656_s28 }
 0x3b4   : > { %v1592_v55 = vpop.f32.mrf.mxu0  ;;  %v1597_v57 = vpop.f32.mrf.mxu1 }
 0x3b5   : > { %v1293_v58 = vpack.c.bf16 %v1289_v54, %v1289_v54  ;;  %v1339_v59 = vrot.slane %v1332_v53, %v1711_v12 }
 0x3b6   : > { %v1279_v60 = vpop.f32.mrf.mxu1 }
 0x3b7   : > { %v1346_v61 = vrot.slane %v1293_v58, %v1711_v12  ;;  %1358 = vrot.lane.b32.xlu1 %v1339_v59, %s1656_s28 }
 0x3b8   : > { %v1598_v62 = vpop.f32.mrf.mxu1 }
 0x3b9   : > { %v1353_v63 = vrot.slane %v1346_v61, %v1711_v12 }
 0x3bb   : > { %1360 = vrot.lane.b32.xlu1 %v1353_v63, %s1656_s28 }
 0x421   : > { %v1355_v1 = vpop.permute.xlu0 %1354 }
 0x422   : > { %1367 = vst.msk [vmem:[%s1893_s27] sm:$0x1] %vm1366_vm6, %v1355_v1 }
 0x425   : > { %v1357_v2 = vpop.permute.xlu1 %1356 }
 0x426   : > { %1368 = vst.msk [vmem:[%s1893_s27 + $0x1] sm:$0x1] %vm1366_vm6, %v1357_v2 }
 0x429   : > { %v1359_v3 = vpop.permute.xlu1 %1358 }
 0x42a   : > { %1369 = vst.msk [vmem:[%s1893_s27 + $0x2] sm:$0x1] %vm1366_vm6, %v1359_v3 }
 0x42d   : > { %v1361_v4 = vpop.permute.xlu1 %1360 }
 0x42e   : > { %1370 = vst.msk [vmem:[%s1893_s27 + $0x3] sm:$0x1] %vm1366_vm6, %v1361_v4 }
 0x42f PF: > { %s13_s12 = sadd.s32 1, %s1650_s12  }
 0x430   : > { %p10_p4 = scmp.ge.s32.totalorder %s13_s12, 4  }
 0x432   :  { %12 = sbr.rel (!%p10_p4) target bundleno = 1 (0x1), region = 68 }

// kernel: _lambda_.19
= control target key start
LH: loop header
LB: loop body
LE: loop exit
PB: predicated region body
PF: predicated region fallthrough
CT: control target
= control target key end

     0   :  { %vm23_vm0 = vcmask 261120   ;;  %v203_v14 = vmov 0.0   ;;  %vm204_vm1 = vmmov 0   ;;  %vm163_vm2 = vcmask 519168   ;;  %s267_s0 = inlined_call_operand.vmem [shape: f32[16,32], index: 0, kind: input, shape index: {}]   ;;  %s268_s3 = inlined_call_operand.vmem [shape: bf16[32,64], index: 3, kind: input, shape index: {}]   ;;  %s269_s1 = inlined_call_operand.vmem [shape: f32[1,32], index: 1, kind: input, shape index: {}]   ;;  %s270_s2 = inlined_call_operand.vmem [shape: f32[1,32], index: 2, kind: input, shape index: {}]   ;;  %s271_s4 = inlined_call_operand.vmem [shape: f32[1,64], index: 4, kind: input, shape index: {}]   ;;  %s272_s5 = inlined_call_operand.vmem [shape: bf16[16,64], index: 5, kind: output, shape index: {}]  }
   0x1   :  { %v21_v0 = vld [vmem:[%s267_s0] sm:$0xff]  ;;  %v22_v1 = vld [vmem:[%s267_s0 + $0x8] sm:$0xff]  ;;  %183 = vmatprep.subr.bf16.mxu0 %v203_v14  ;;  %187 = vmatprep.mubr.msk.bf16.mxu0 %vm204_vm1, %v203_v14 }
   0x2   :  { %v24_v2 = vsel %vm23_vm0, %v21_v0, 0.0  ;;  %v27_v3 = vsel %vm23_vm0, %v22_v1, 0.0  ;;  %v193_v15 = vld [vmem:[%s268_s3 + $0x8] sm:$0xff]   ;;  %v194_v16 = vld [vmem:[%s268_s3] sm:$0xff]  }
   0x3   :  { %25 = vadd.xlane.f32.xlu0 %v24_v2  ;;  %184 = vmatpush3.bf16.msra.mxu0 %v193_v15  ;;  %v170_v25 = vld [vmem:[%s269_s1] ss:$0 sm:$0xff] }
   0x4   :  { %185 = vmatprep.subr.bf16.mxu0 %v203_v14  ;;  %v171_v29 = vld [vmem:[%s270_s2] ss:$0 sm:$0xff] }
   0x5   :  { %v172_v34 = vld [vmem:[%s271_s4] ss:$0 sm:$0xff] }
   0x7   :  { %28 = vadd.xlane.f32.xlu0 %v27_v3  ;;  %186 = vmatpush3.bf16.msra.mxu0 %v194_v16 }
  0x8c   :  { %v26_v4 = vpop.xlane.xlu0 %25 }
  0x8d   :  { %v31_v5 = vmul.f32 0.03125, %v26_v4 }
  0x8f   :  { %v33_v6 = vsub.f32 %v21_v0, %v31_v5 }
  0x90   :  { %v29_v7 = vpop.xlane.xlu0 %28 }
  0x91   :  { %v32_v8 = vmul.f32 0.03125, %v29_v7  ;;  %v35_v9 = vmul.f32 %v33_v6, %v33_v6 }
  0x93   :  { %v34_v10 = vsub.f32 %v22_v1, %v32_v8  ;;  %v37_v11 = vsel %vm23_vm0, %v35_v9, 0.0 }
  0x94   :  { %38 = vadd.xlane.f32.xlu1 %v37_v11 }
  0x95   :  { %v36_v12 = vmul.f32 %v34_v10, %v34_v10 }
  0x97   :  { %v40_v13 = vsel %vm23_vm0, %v36_v12, 0.0 }
  0x98   :  { %41 = vadd.xlane.f32.xlu1 %v40_v13 }
 0x11d   :  { %v39_v17 = vpop.xlane.xlu1 %38 }
 0x11e   :  { %v43_v18 = vmul.f32 0.03125, %v39_v17 }
 0x120   :  { %v45_v19 = vadd.f32 1e-05, %v43_v18 }
 0x121   :  { %v42_v20 = vpop.xlane.xlu1 %41 }
 0x122   :  { %195 = vrsqrt.f32 %v45_v19  ;;  %v44_v21 = vmul.f32 0.03125, %v42_v20 }
 0x124   :  { %v46_v22 = vadd.f32 1e-05, %v44_v21 }
 0x126   :  { %197 = vrsqrt.f32 %v46_v22 }
 0x12f   :  { %v196_v23 = vpop.eup %195 }
 0x130   :  { %v49_v24 = vmul.f32 %v196_v23, %v33_v6 }
 0x132   :  { %v58_v28 = vmul.f32 %v170_v25, %v49_v24 }
 0x133   :  { %v198_v26 = vpop.eup %197 }
 0x134   :  { %v50_v27 = vmul.f32 %v198_v26, %v34_v10  ;;  %v67_v31 = vadd.f32 %v171_v29, %v58_v28 }
 0x136   :  { %v59_v30 = vmul.f32 %v170_v25, %v50_v27 }
 0x138   :  { %v68_v32 = vadd.f32 %v171_v29, %v59_v30 }
 0x13a   :  { %v69_v33 = vpack.c.bf16 %v68_v32, %v67_v31 }
 0x13c   :  { %188 = vmatmul.mubr.msk.bf16.vlgmr.msra.gmra.mxu0 %vm23_vm0, %v69_v33 }
 0x1fc   :  { %v130_v35 = vpop.f32.mrf.mxu0 }
 0x1fd   :  { %v131_v36 = vadd.f32 %v172_v34, %v130_v35 }
 0x1fe   :  { %v189_v37 = vpop.f32.mrf.mxu0 }
 0x1ff   :  { %v137_v38 = vmul.f32 %v131_v36, %v131_v36 }
 0x200   :  { %v133_v39 = vpop.f32.mrf.mxu0 }
 0x201   :  { %v139_v40 = vmul.f32 %v137_v38, %v131_v36  ;;  %v134_v41 = vadd.f32 %v172_v34, %v133_v39 }
 0x202   :  { %v190_v42 = vpop.f32.mrf.mxu0 }
 0x203   :  { %v141_v43 = vmul.f32 0.044715, %v139_v40  ;;  %v138_v44 = vmul.f32 %v134_v41, %v134_v41 }
 0x205   :  { %v143_v45 = vadd.f32 %v141_v43, %v131_v36  ;;  %v140_v46 = vmul.f32 %v138_v44, %v134_v41 }
 0x207   :  { %v145_v47 = vmul.f32 0.7978846, %v143_v45  ;;  %v142_v48 = vmul.f32 0.044715, %v140_v46 }
 0x209   :  { %199 = vtanh.f32 %v145_v47  ;;  %v144_v49 = vadd.f32 %v142_v48, %v134_v41 }
 0x20b   :  { %v146_v50 = vmul.f32 0.7978846, %v144_v49 }
 0x20d   :  { %201 = vtanh.f32 %v146_v50 }
 0x216   :  { %v200_v51 = vpop.eup %199 }
 0x217   :  { %v149_v52 = vadd.f32 1.0, %v200_v51 }
 0x219   :  { %v151_v53 = vmul.f32 0.5, %v149_v52 }
 0x21a   :  { %v202_v54 = vpop.eup %201 }
 0x21b   :  { %v153_v55 = vmul.f32 %v151_v53, %v131_v36  ;;  %v150_v56 = vadd.f32 1.0, %v202_v54 }
 0x21d   :  { %v178_v57 = vpack.c.bf16 %v153_v55, %v153_v55  ;;  %v152_v58 = vmul.f32 0.5, %v150_v56 }
 0x21f   :  { %164 = vst.msk [vmem:[%s272_s5] sm:$0xf] %vm163_vm2, %v178_v57  ;;  %v154_v59 = vmul.f32 %v152_v58, %v134_v41 }
 0x221   :  { %v179_v60 = vpack.c.bf16 %v154_v59, %v154_v59 }
 0x223   :  { %165 = vst.msk [vmem:[%s272_s5 + $0x4] sm:$0xf] %vm163_vm2, %v179_v60 }

// kernel: _lambda_.16
= control target key start
LH: loop header
LB: loop body
LE: loop exit
PB: predicated region body
PF: predicated region fallthrough
CT: control target
= control target key end

     0   :  { %s981_s12 = smov 0   ;;  %s1098_s0 = inlined_call_operand.vmem [shape: bf16[4,4,16], index: 0, kind: input, shape index: {}]   ;;  %s1099_s1 = inlined_call_operand.vmem [shape: bf16[4,4,16], index: 1, kind: input, shape index: {}]   ;;  %s1100_s2 = inlined_call_operand.vmem [shape: bf16[4,4,16], index: 2, kind: input, shape index: {}]   ;;  %s1101_s3 = inlined_call_operand.vmem [shape: bf16[4,4,16], index: 3, kind: output, shape index: {}]  }
   0x1 LB: > { %s828_s13 = sadd.s32 4294967295, %s954_s12   ;;  %p832_p0 = scmp.ge.s32.totalorder %s954_s12, 1  ;;  %s954_s12 = sphi %s981_s12, %s13_s12  }
   0x2   : > { %p160_p1 = scmp.lt.s32.totalorder %s954_s12, 3 }
   0x4   : > { %p161_p2 = pnand %p832_p0, %p160_p1 }
   0x5   : > { %s833_s14 = sshll.u32 (!%p161_p2), %s828_s13, 1  ;;  %s958_s22 = smov (!%p161_p2), 120  }
   0x6   : > { %164 = sbr.rel (%p161_p2) target bundleno = 1054 (0x41e), region = 32  ;;  %p195_p3 = scmp.lt.s32.totalorder (!%p161_p2), %s833_s14, 3 }
   0x7   : > { %s960_s29 = smov (!%p161_p2), 8  }
   0xb   : > { %v956_v0 = vmov 0.0   ;;  %vm957_vm0 = vmmov 0   ;;  %s1103_s14 = smov (!%p195_p3, %s833_s14), 3  ;;  %vm228_vm1 = vcmask 64512   ;;  %v959_v11 = vmov 1983009808  }
   0xc   : > { %871 = vmatprep.subr.bf16.mxu0 %v956_v0  ;;  %877 = vmatprep.subr.bf16.mxu1 %v956_v0  ;;  %s995_s15 = sshll.u32 %s1103_s14, 1  ;;  %v455_v12 = vunpack.c.l.s4 %v959_v11  ;;  %v457_v13 = vlaneseq  ;;  %vm321_vm2 = vcmask 27648   ;;  %vm346_vm3 = vcmask 1041408  }
   0xd   : > { %873 = vmatprep.mubr.msk.bf16.mxu0 %vm957_vm0, %v956_v0  ;;  %879 = vmatprep.mubr.msk.bf16.mxu1 %vm957_vm0, %v956_v0  ;;  %s204_s18 = scalar_lea.vmem %s1099_s1, %s995_s15  ;;  %s1005_s21 = scalar_lea.vmem %s1098_s0, %s995_s15  ;;  %vm342_vm4 = vcmask 31744   ;;  %vm442_vm5 = vcmask 58368   ;;  %vm745_vm6 = vcmask 123968  }
   0xe   : > { %v224_v1 = vld [vmem:[%s204_s18] sm:$0x3]  ;;  %v225_v2 = vld [vmem:[%s204_s18 + $0x2] sm:$0x3]  ;;  %v456_v14 = vunpack.c.0.s8 %v455_v12  ;;  %v458_v15 = vshrl.u32 %v457_v13, 7  ;;  %s1033_s25 = scalar_lea.vmem %s1100_s2, %s995_s15  ;;  %s1087_s28 = scalar_lea.vmem %s1101_s3, %s995_s15 }
   0xf   : > { %v233_v3 = vsel %vm228_vm1, %v224_v1, 0  ;;  %v279_v4 = vsel %vm228_vm1, %v225_v2, 0  ;;  %v220_v5 = vld [vmem:[%s1005_s21] sm:$0x3]  ;;  %v221_v6 = vld [vmem:[%s1005_s21 + $0x2] sm:$0x3] }
  0x10   : > { %872 = vmatpush3.bf16.xpose.msra.mxu0 %v233_v3  ;;  %878 = vmatpush3.bf16.xpose.msra.mxu1 %v279_v4  ;;  %v222_v7 = vmul.bf16 1052065461, %v220_v5  ;;  %v223_v8 = vmul.bf16 1052065461, %v221_v6  ;;  %v446_v16 = vld [vmem:[%s1005_s21 + $0x2] sm:$0x3]  ;;  %v1022_v17 = vsub.s32 %v456_v14, %v458_v15 }
  0x11   : > { %883 = vmatprep.subr.bf16.mxu0 %v956_v0  ;;  %889 = vmatprep.subr.bf16.mxu1 %v956_v0  ;;  %v845_v9 = vld.sshfl [vmem:[%s204_s18] sm:$0x3 pattern:$0x76325410]  ;;  %v448_v18 = vmul.bf16 1052065461, %v446_v16 }
  0x12   : > { %471 = vrot.lane.b32.xlu1 %v845_v9, %s958_s22  ;;  %v847_v10 = vld.sshfl [vmem:[%s204_s18 + $0x2] sm:$0x3 pattern:$0x76325410]  ;;  %v445_v30 = vld [vmem:[%s1005_s21] sm:$0x3] }
  0x13   : > { %v526_v19 = vrot.slane %v448_v18, %v1022_v17  ;;  %v447_v31 = vmul.bf16 1052065461, %v445_v30  ;;  %v226_v32 = vld [vmem:[%s1033_s25] sm:$0x3]  ;;  %v227_v33 = vld [vmem:[%s1033_s25 + $0x2] sm:$0x3] }
  0x14   : > { %v348_v34 = vsel %vm346_vm3, %v226_v32, 0  ;;  %v394_v35 = vsel %vm346_vm3, %v227_v33, 0 }
  0x15   : > { %v460_v36 = vrot.slane %v447_v31, %v1022_v17 }
  0x16   : > { %537 = vrot.lane.b32.xlu1 %v847_v10, %s958_s22 }
  0x17   : > { %874 = vmatmul.mubr.msk.bf16.vlgmr.msra.gmra.mxu0 %vm228_vm1, %v222_v7  ;;  %880 = vmatmul.mubr.msk.bf16.vlgmr.msra.gmra.mxu1 %vm228_vm1, %v223_v8  ;;  %v849_v7 = vld.sshfl [vmem:[%s1033_s25] sm:$0x3 pattern:$0x76325410] }
  0x18   : > { %885 = vmatprep.mubr.msk.bf16.mxu0 %vm957_vm0, %v956_v0  ;;  %891 = vmatprep.mubr.msk.bf16.mxu1 %vm957_vm0, %v956_v0  ;;  %v851_v8 = vld.sshfl [vmem:[%s1033_s25 + $0x2] sm:$0x3 pattern:$0x76325410] }
  0x19   : > { %884 = vmatpush3.bf16.msra.mxu0 %v348_v34  ;;  %890 = vmatpush3.bf16.msra.mxu1 %v394_v35 }
  0x1a   : > { %527 = vrot.lane.b32.xlu1 %v526_v19, %s958_s22  ;;  %895 = vmatprep.subr.bf16.mxu0 %v956_v0 }
  0x1b   : > { %901 = vmatprep.subr.bf16.mxu1 %v956_v0 }
  0x84   : > { %v472_v43 = vpop.permute.xlu1 %471 }
  0x85   : > { %v477_v45 = vsel %vm228_vm1, %v472_v43, 0 }
  0x88   : > { %v538_v47 = vpop.permute.xlu1 %537 }
  0x89   : > { %v543_v49 = vsel %vm228_vm1, %v538_v47, 0 }
  0x8c   : > { %v528_v52 = vpop.permute.xlu1 %527 }
  0xd7   : > { %v269_v20 = vpop.f32.mrf.mxu0  ;;  %v315_v21 = vpop.f32.mrf.mxu1 }
  0xd8   : > { %v322_v22 = vsel %vm321_vm2, %v269_v20, -inf  ;;  %v325_v25 = vsel %vm321_vm2, %v315_v21, -inf }
  0xd9   : > { %v881_v23 = vpop.f32.mrf.mxu1  ;;  %323 = vmax.xlane.f32.xlu0 %v322_v22  ;;  %v875_v24 = vpop.f32.mrf.mxu0 }
  0xdb   : > { %v272_v26 = vpop.f32.mrf.mxu0  ;;  %v318_v27 = vpop.f32.mrf.mxu1 }
  0xdd   : > { %v882_v28 = vpop.f32.mrf.mxu1  ;;  %326 = vmax.xlane.f32.xlu0 %v325_v25  ;;  %v876_v29 = vpop.f32.mrf.mxu0 }
  0xf3   : > { %461 = vrot.lane.b32.xlu0 %v460_v36, %s958_s22 }
 0x162   : > { %v324_v37 = vpop.xlane.xlu0 %323 }
 0x163   : > { %v328_v38 = vsub.f32 %v269_v20, %v324_v37 }
 0x165   : > { %v330_v39 = vmul.f32 1.442695, %v328_v38 }
 0x166   : > { %v327_v40 = vpop.xlane.xlu0 %326 }
 0x167   : > { %932 = vpow2.f32 %v330_v39  ;;  %v329_v41 = vsub.f32 %v315_v21, %v327_v40 }
 0x169   : > { %v332_v42 = vmul.f32 1.442695, %v329_v41 }
 0x16a   : > { %v462_v51 = vpop.permute.xlu0 %461 }
 0x16b   : > { %934 = vpow2.f32 %v332_v42 }
 0x174   : > { %v1043_v44 = vpop.eup %932 }
 0x175   : > { %v340_v46 = vpack.c.bf16 %v1043_v44, %v1043_v44  ;;  %v334_v25 = vsel %vm321_vm2, %v1043_v44, 0.0 }
 0x177   : > { %886 = vmatmul.mubr.msk.bf16.vlgmr.msra.gmra.mxu0 %vm342_vm4, %v340_v46 }
 0x178   : > { %v1049_v48 = vpop.eup %934  ;;  %896 = vmatpush3.bf16.xpose.msra.mxu0 %v477_v45  ;;  %897 = vmatprep.mubr.msk.bf16.mxu0 %vm957_vm0, %v956_v0 }
 0x179   : > { %v341_v50 = vpack.c.bf16 %v1049_v48, %v1049_v48  ;;  %907 = vmatprep.subr.bf16.mxu0 %v956_v0  ;;  %v337_v27 = vsel %vm321_vm2, %v1049_v48, 0.0 }
 0x17b   : > { %892 = vmatmul.mubr.msk.bf16.vlgmr.msra.gmra.mxu1 %vm342_vm4, %v341_v50 }
 0x17c   : > { %902 = vmatpush3.bf16.xpose.msra.mxu1 %v543_v49  ;;  %903 = vmatprep.mubr.msk.bf16.mxu1 %vm957_vm0, %v956_v0 }
 0x17d   : > { %913 = vmatprep.subr.bf16.mxu1 %v956_v0 }
 0x17f   : > { %898 = vmatmul.mubr.msk.bf16.vlgmr.msra.gmra.mxu0 %vm228_vm1, %v462_v51 }
 0x180   : > { %909 = vmatprep.mubr.msk.bf16.mxu0 %vm957_vm0, %v956_v0 }
 0x183   : > { %904 = vmatmul.mubr.msk.bf16.vlgmr.msra.gmra.mxu1 %vm228_vm1, %v528_v52 }
 0x184   : > { %915 = vmatprep.mubr.msk.bf16.mxu1 %vm957_vm0, %v956_v0 }
 0x237   : > { %v384_v53 = vpop.f32.mrf.mxu0 }
 0x239   : > { %v887_v54 = vpop.f32.mrf.mxu0 }
 0x23b   : > { %v387_v55 = vpop.f32.mrf.mxu0  ;;  %v430_v56 = vpop.f32.mrf.mxu1 }
 0x23d   : > { %v888_v57 = vpop.f32.mrf.mxu0  ;;  %v893_v58 = vpop.f32.mrf.mxu1 }
 0x23f   : > { %v433_v59 = vpop.f32.mrf.mxu1  ;;  %v513_v60 = vpop.f32.mrf.mxu0 }
 0x240   : > { %v585_v61 = vsel %vm321_vm2, %v513_v60, -inf }
 0x241   : > { %v894_v62 = vpop.f32.mrf.mxu1  ;;  %586 = vmax.xlane.f32.xlu1 %v585_v61  ;;  %v899_v63 = vpop.f32.mrf.mxu0 }
 0x243   : > { %v516_v1 = vpop.f32.mrf.mxu0  ;;  %v579_v2 = vpop.f32.mrf.mxu1 }
 0x244   : > { %v588_v3 = vsel %vm321_vm2, %v579_v2, -inf }
 0x245   : > { %589 = vmax.xlane.f32.xlu0 %v588_v3  ;;  %v900_v0 = vpop.f32.mrf.mxu0  ;;  %v905_v4 = vpop.f32.mrf.mxu1 }
 0x247   : > { %v582_v5 = vpop.f32.mrf.mxu1 }
 0x249   : > { %v906_v6 = vpop.f32.mrf.mxu1 }
 0x252   : > { %613 = vrot.lane.b32.xlu1 %v849_v7, %s958_s22 }
 0x25b   : > { %669 = vrot.lane.b32.xlu0 %v851_v8, %s958_s22 }
 0x2ca   : > { %v587_v9 = vpop.xlane.xlu1 %586 }
 0x2cb   : > { %v591_v10 = vsub.f32 %v513_v60, %v587_v9 }
 0x2cd   : > { %v593_v11 = vmul.f32 1.442695, %v591_v10 }
 0x2ce   : > { %v590_v12 = vpop.xlane.xlu0 %589  ;;  %v614_v13 = vpop.permute.xlu1 %613 }
 0x2cf   : > { %936 = vpow2.f32 %v593_v11  ;;  %v592_v14 = vsub.f32 %v579_v2, %v590_v12  ;;  %v619_v15 = vsel %vm346_vm3, %v614_v13, 0 }
 0x2d0   : > { %908 = vmatpush3.bf16.msra.mxu0 %v619_v15 }
 0x2d1   : > { %v595_v16 = vmul.f32 1.442695, %v592_v14 }
 0x2d2   : > { %v670_v18 = vpop.permute.xlu0 %669 }
 0x2d3   : > { %938 = vpow2.f32 %v595_v16  ;;  %v675_v19 = vsel %vm346_vm3, %v670_v18, 0 }
 0x2d4   : > { %914 = vmatpush3.bf16.msra.mxu1 %v675_v19 }
 0x2dc   : > { %v937_v20 = vpop.eup %936 }
 0x2dd   : > { %v597_v21 = vsel %vm321_vm2, %v937_v20, 0.0  ;;  %v603_v22 = vpack.c.bf16 %v937_v20, %v937_v20 }
 0x2de   : > { %598 = vadd.xlane.f32.xlu1 %v597_v21 }
 0x2df   : > { %910 = vmatmul.mubr.msk.bf16.vlgmr.msra.gmra.mxu0 %vm342_vm4, %v603_v22 }
 0x2e0   : > { %v939_v23 = vpop.eup %938 }
 0x2e1   : > { %v600_v24 = vsel %vm321_vm2, %v939_v23, 0.0  ;;  %v604_v26 = vpack.c.bf16 %v939_v23, %v939_v23 }
 0x2e2   : > { %601 = vadd.xlane.f32.xlu0 %v600_v24  ;;  %335 = vadd.xlane.f32.xlu1 %v334_v25 }
 0x2e3   : > { %916 = vmatmul.mubr.msk.bf16.vlgmr.msra.gmra.mxu1 %vm342_vm4, %v604_v26 }
 0x2e6   : > { %338 = vadd.xlane.f32.xlu1 %v337_v27 }
 0x367   : > { %v599_v28 = vpop.xlane.xlu1 %598 }
 0x36b   : > { %v336_v29 = vpop.xlane.xlu1 %335  ;;  %v602_v37 = vpop.xlane.xlu0 %601 }
 0x36c   : > { %940 = vrcp.f32 %v336_v29 }
 0x36f   : > { %v339_v30 = vpop.xlane.xlu1 %338 }
 0x370   : > { %942 = vrcp.f32 %v339_v30 }
 0x371   : > { %944 = vrcp.f32 %v599_v28 }
 0x372   : > { %946 = vrcp.f32 %v602_v37 }
 0x379   : > { %v941_v31 = vpop.eup %940 }
 0x37a   : > { %v438_v32 = vmul.f32 %v941_v31, %v384_v53 }
 0x37c   : > { %v440_v34 = vpack.c.bf16 %v438_v32, %v438_v32 }
 0x37d   : > { %v943_v33 = vpop.eup %942 }
 0x37e   : > { %v439_v35 = vmul.f32 %v943_v33, %v430_v56  ;;  %443 = vst.msk [vmem:[%s1087_s28] sm:$0x3] %vm442_vm5, %v440_v34  ;;  %v945_v38 = vpop.eup %944 }
 0x37f   : > { %v947_v43 = vpop.eup %946 }
 0x380   : > { %v441_v36 = vpack.c.bf16 %v439_v35, %v439_v35 }
 0x382   : > { %444 = vst.msk [vmem:[%s1087_s28 + $0x2] sm:$0x3] %vm442_vm5, %v441_v36 }
 0x39f   : > { %v655_v39 = vpop.f32.mrf.mxu0 }
 0x3a0   : > { %v719_v40 = vmul.f32 %v945_v38, %v655_v39 }
 0x3a1   : > { %v911_v41 = vpop.f32.mrf.mxu0 }
 0x3a2   : > { %v721_v42 = vpack.c.bf16 %v719_v40, %v719_v40 }
 0x3a3   : > { %v658_v44 = vpop.f32.mrf.mxu0  ;;  %v711_v45 = vpop.f32.mrf.mxu1 }
 0x3a4   : > { %v731_v46 = vrot.slane %v721_v42, %v1022_v17  ;;  %v720_v47 = vmul.f32 %v947_v43, %v711_v45 }
 0x3a5   : > { %v912_v48 = vpop.f32.mrf.mxu0  ;;  %v917_v49 = vpop.f32.mrf.mxu1 }
 0x3a6   : > { %v722_v50 = vpack.c.bf16 %v720_v47, %v720_v47  ;;  %739 = vrot.lane.b32.xlu1 %v731_v46, %s960_s29 }
 0x3a7   : > { %v714_v51 = vpop.f32.mrf.mxu1 }
 0x3a8   : > { %v738_v52 = vrot.slane %v722_v50, %v1022_v17 }
 0x3a9   : > { %v918_v53 = vpop.f32.mrf.mxu1 }
 0x3aa   : > { %741 = vrot.lane.b32.xlu0 %v738_v52, %s960_s29 }
 0x418   : > { %v740_v54 = vpop.permute.xlu1 %739 }
 0x419   : > { %746 = vst.msk [vmem:[%s1087_s28] sm:$0x3] %vm745_vm6, %v740_v54 }
 0x41c   : > { %v742_v55 = vpop.permute.xlu0 %741 }
 0x41d   : > { %747 = vst.msk [vmem:[%s1087_s28 + $0x2] sm:$0x3] %vm745_vm6, %v742_v55 }
 0x41e PF: > { %s13_s12 = sadd.s32 1, %s954_s12  }
 0x41f   : > { %p10_p4 = scmp.ge.s32.totalorder %s13_s12, 4  }
 0x421   :  { %12 = sbr.rel (!%p10_p4) target bundleno = 1 (0x1), region = 68 }

// kernel: _lambda_.20
= control target key start
LH: loop header
LB: loop body
LE: loop exit
PB: predicated region body
PF: predicated region fallthrough
CT: control target
= control target key end

     0   :  { %v151_v0 = vmov 0.0   ;;  %vm152_vm0 = vmmov 0   ;;  %vm64_vm1 = vcmask 523264   ;;  %vm113_vm2 = vcmask 261120   ;;  %s208_s1 = inlined_call_operand.vmem [shape: bf16[64,32], index: 1, kind: input, shape index: {}]   ;;  %s209_s0 = inlined_call_operand.vmem [shape: bf16[16,64], index: 0, kind: input, shape index: {}]   ;;  %s210_s2 = inlined_call_operand.vmem [shape: f32[1,32], index: 2, kind: input, shape index: {}]   ;;  %s211_s3 = inlined_call_operand.vmem [shape: f32[16,32], index: 3, kind: input, shape index: {}]   ;;  %s212_s4 = inlined_call_operand.vmem [shape: f32[16,32], index: 4, kind: output, shape index: {}]  }
   0x1   :  { %132 = vmatprep.subr.bf16.mxu0 %v151_v0  ;;  %v146_v1 = vld [vmem:[%s208_s1 + $0x18] sm:$0xff]   ;;  %140 = vmatprep.mubr.msk.bf16.mxu0 %vm152_vm0, %v151_v0  ;;  %v147_v2 = vld [vmem:[%s208_s1 + $0x10] sm:$0xff]   ;;  %v148_v3 = vld [vmem:[%s208_s1 + $0x8] sm:$0xff]  }
   0x2   :  { %133 = vmatpush3.bf16.msra.mxu0 %v146_v1  ;;  %v149_v4 = vld [vmem:[%s208_s1] sm:$0xff]   ;;  %v110_v13 = vld [vmem:[%s211_s3 + $0x8] sm:$0xff] }
   0x3   :  { %134 = vmatprep.subr.bf16.mxu0 %v151_v0  ;;  %v150_v5 = vld [vmem:[%s209_s0] sm:$0xff]  }
   0x4   :  { %v120_v6 = vld [vmem:[%s210_s2] ss:$0 sm:$0xff] }
   0x5   :  { %v109_v8 = vld [vmem:[%s211_s3] sm:$0xff] }
   0x6   :  { %135 = vmatpush3.bf16.msra.mxu0 %v147_v2 }
   0x7   :  { %136 = vmatprep.subr.bf16.mxu0 %v151_v0 }
   0xa   :  { %137 = vmatpush3.bf16.msra.mxu0 %v148_v3 }
   0xb   :  { %138 = vmatprep.subr.bf16.mxu0 %v151_v0 }
   0xe   :  { %139 = vmatpush3.bf16.msra.mxu0 %v149_v4 }
  0x11   :  { %141 = vmatmul.mubr.msk.bf16.vlgmr.msra.gmra.mxu0 %vm64_vm1, %v150_v5 }
  0xd1   :  { %v102_v7 = vpop.f32.mrf.mxu0 }
  0xd2   :  { %v103_v9 = vadd.f32 %v120_v6, %v102_v7 }
  0xd3   :  { %v142_v10 = vpop.f32.mrf.mxu0 }
  0xd4   :  { %v111_v11 = vadd.f32 %v109_v8, %v103_v9 }
  0xd5   :  { %v105_v12 = vpop.f32.mrf.mxu0 }
  0xd6   :  { %114 = vst.msk [vmem:[%s212_s4] sm:$0xff] %vm113_vm2, %v111_v11  ;;  %v106_v14 = vadd.f32 %v120_v6, %v105_v12 }
  0xd7   :  { %v143_v15 = vpop.f32.mrf.mxu0 }
  0xd8   :  { %v112_v16 = vadd.f32 %v110_v13, %v106_v14 }
  0xda   :  { %115 = vst.msk [vmem:[%s212_s4 + $0x8] sm:$0xff] %vm113_vm2, %v112_v16 }

// kernel: _lambda_.27
= control target key start
LH: loop header
LB: loop body
LE: loop exit
PB: predicated region body
PF: predicated region fallthrough
CT: control target
= control target key end

     0   :  { %vm30_vm0 = vcmask 261120   ;;  %s301_s0 = inlined_call_operand.vmem [shape: f32[2,8,32], index: 0, kind: input, shape index: {}]   ;;  %s302_s1 = inlined_call_operand.vmem [shape: f32[1,32], index: 1, kind: input, shape index: {}]   ;;  %s303_s2 = inlined_call_operand.vmem [shape: f32[1,32], index: 2, kind: input, shape index: {}]   ;;  %s304_s3 = inlined_call_operand.vmem [shape: bf16[32,10], index: 3, kind: input, shape index: {}]   ;;  %s305_s4 = inlined_call_operand.vmem [shape: f32[1,10], index: 4, kind: input, shape index: {}]   ;;  %s306_s5 = inlined_call_operand.hbm [shape: f32[2,10], index: 5, kind: output, shape index: {}]  }
   0x1   :  { %v28_v0 = vld [vmem:[%s301_s0] sm:$0xff]  ;;  %v29_v1 = vld [vmem:[%s301_s0 + $0x8] sm:$0xff] }
   0x2   :  { %v31_v2 = vsel %vm30_vm0, %v28_v0, 0.0 }
   0x3   :  { %32 = vadd.xlane.f32.xlu0 %v31_v2 }
   0x4   :  { %10 = vsyncpa [#allocation4], 0  ;;  %v34_v3 = vsel %vm30_vm0, %v29_v1, 0.0  ;;  %vm26_vm1 = vcmask 254976   ;;  %v235_v14 = vmov 0.0   ;;  %v207_v15 = vld [vmem:[%s304_s3 + $0x8] sm:$0xff]  }
   0x5   :  { %27 = vst.msk [vmem:[#allocation2] sm:$0x3] %vm26_vm1, %v235_v14  ;;  %196 = vmatprep.subr.bf16.mxu0 %v235_v14  ;;  %vm236_vm2 = vmmov 0   ;;  %v208_v16 = vld [vmem:[%s304_s3] sm:$0xff]   ;;  %vm93_vm3 = vcmask 1041409   ;;  %s237_s3 = smov [#allocation3]  }
   0x6   :  { %200 = vmatprep.mubr.msk.bf16.mxu0 %vm236_vm2, %v235_v14  ;;  %197 = vmatpush3.bf16.msra.mxu0 %v207_v15  ;;  %v187_v24 = vld [vmem:[%s302_s1] ss:$0 sm:$0xff]  ;;  %s179_s29 = sshll.u32 %s237_s3, 4  ;;  %vm171_vm4 = vcmask 74752   ;;  %s180_s29 = int_to_ptr.vmem [resolvable:$true] %s179_s29 }
   0x7   :  { %35 = vadd.xlane.f32.xlu0 %v34_v3  ;;  %198 = vmatprep.subr.bf16.mxu0 %v235_v14  ;;  %v188_v26 = vld [vmem:[%s303_s2] ss:$0 sm:$0xff]  ;;  %s213_s30 = scalar_lea.vmem %s180_s29, 32  ;;  %p218_p1 = scmp.lt.s32.totalorder %s180_s29, %s180_s29 }
   0x8   :  { %v189_v53 = vld [vmem:[%s305_s4] ss:$0 sm:$0xff]  ;;  %p214_p0 = scmp.ne.s32.totalorder %s180_s29, %s213_s30  ;;  %p219_p2 = scmp.lt.s32.totalorder %s213_s30, %s213_s30 }
   0xa   :  { %199 = vmatpush3.bf16.msra.mxu0 %v208_v16  ;;  %p220_p3 = por %p219_p2, %p218_p1 }
   0xc   :  { %v76_v45 = vld [vmem:[#allocation2] sm:$0x3]  ;;  %p221_p4 = pnand %p220_p3, %p214_p0 }
  0x8c   :  { %v33_v4 = vpop.xlane.xlu0 %32 }
  0x8d   :  { %v38_v5 = vmul.f32 0.03125, %v33_v4 }
  0x8f   :  { %v40_v6 = vsub.f32 %v28_v0, %v38_v5 }
  0x90   :  { %v36_v7 = vpop.xlane.xlu0 %35 }
  0x91   :  { %v39_v8 = vmul.f32 0.03125, %v36_v7  ;;  %v42_v9 = vmul.f32 %v40_v6, %v40_v6 }
  0x93   :  { %v41_v10 = vsub.f32 %v29_v1, %v39_v8  ;;  %v44_v11 = vsel %vm30_vm0, %v42_v9, 0.0 }
  0x94   :  { %45 = vadd.xlane.f32.xlu1 %v44_v11 }
  0x95   :  { %v43_v12 = vmul.f32 %v41_v10, %v41_v10 }
  0x97   :  { %v47_v13 = vsel %vm30_vm0, %v43_v12, 0.0 }
  0x98   :  { %48 = vadd.xlane.f32.xlu1 %v47_v13 }
 0x11d   :  { %v46_v17 = vpop.xlane.xlu1 %45 }
 0x11e   :  { %v50_v18 = vmul.f32 0.03125, %v46_v17 }
 0x120   :  { %v52_v19 = vadd.f32 1e-05, %v50_v18 }
 0x121   :  { %v49_v20 = vpop.xlane.xlu1 %48 }
 0x122   :  { %209 = vrsqrt.f32 %v52_v19  ;;  %v51_v21 = vmul.f32 0.03125, %v49_v20 }
 0x124   :  { %v53_v22 = vadd.f32 1e-05, %v51_v21 }
 0x126   :  { %211 = vrsqrt.f32 %v53_v22 }
 0x12f   :  { %v210_v23 = vpop.eup %209 }
 0x130   :  { %v56_v25 = vmul.f32 %v210_v23, %v40_v6 }
 0x132   :  { %v65_v27 = vmul.f32 %v187_v24, %v56_v25 }
 0x133   :  { %v212_v28 = vpop.eup %211 }
 0x134   :  { %v74_v29 = vadd.f32 %v188_v26, %v65_v27  ;;  %v57_v30 = vmul.f32 %v212_v28, %v41_v10 }
 0x136   :  { %v77_v31 = vsel %vm30_vm0, %v74_v29, 0.0  ;;  %v66_v32 = vmul.f32 %v187_v24, %v57_v30 }
 0x137   :  { %v78_v33 = vrot.slane %v77_v31, 4 }
 0x138   :  { %v75_v34 = vadd.f32 %v188_v26, %v66_v32 }
 0x139   :  { %v79_v35 = vadd.f32 %v78_v33, %v77_v31 }
 0x13a   :  { %v84_v36 = vsel %vm30_vm0, %v75_v34, 0.0 }
 0x13b   :  { %v80_v37 = vrot.slane %v79_v35, 2  ;;  %v85_v38 = vrot.slane %v84_v36, 4 }
 0x13d   :  { %v86_v39 = vadd.f32 %v85_v38, %v84_v36  ;;  %v81_v40 = vadd.f32 %v80_v37, %v79_v35 }
 0x13f   :  { %v87_v41 = vrot.slane %v86_v39, 2  ;;  %v82_v43 = vrot.slane %v81_v40, 1 }
 0x141   :  { %v88_v42 = vadd.f32 %v87_v41, %v86_v39  ;;  %v83_v46 = vadd.f32 %v82_v43, %v81_v40 }
 0x143   :  { %v89_v44 = vrot.slane %v88_v42, 1 }
 0x145   :  { %v90_v47 = vadd.f32 %v89_v44, %v88_v42 }
 0x147   :  { %v94_v48 = vsel %vm93_vm3, %v90_v47, %v83_v46 }
 0x148   :  { %v96_v49 = vadd.f32 %v94_v48, %v76_v45 }
 0x14a   :  { %98 = vst.msk [vmem:[#allocation2] sm:$0x3] %vm26_vm1, %v96_v49 }
 0x151   :  { %v102_v50 = vld [vmem:[#allocation2] sm:$0x3] }
 0x152   :  { %v103_v51 = vmul.f32 0.125, %v102_v50 }
 0x154   :  { %v104_v52 = vpack.c.bf16 %v103_v51, %v103_v51 }
 0x156   :  { %201 = vmatmul.mubr.msk.bf16.vlgmr.msra.gmra.mxu0 %vm30_vm0, %v104_v52 }
 0x216   :  { %v165_v54 = vpop.f32.mrf.mxu0 }
 0x217   :  { %v166_v55 = vadd.f32 %v189_v53, %v165_v54 }
 0x218   :  { %v202_v56 = vpop.f32.mrf.mxu0 }
 0x219   :  { %172 = vst.msk [vmem:[#allocation3] sm:$0x3] %vm171_vm4, %v166_v55 }
 0x21a   :  { %v168_v57 = vpop.f32.mrf.mxu0 }
 0x21b   :  { %224 = shalt.err (!%p221_p4)
}
 0x21c   :  { %182 = dma.vmem_to_hbm [thread:$0]  %s180_s29, 32, %s306_s5, [#allocation4]   ;;  %v203_v58 = vpop.f32.mrf.mxu0 }
 0x21d   :  { %233 = dma.done.wait [#allocation4], 32  }
 0x21e   :  { %234 = vsyncadd [#allocation4], 4294967264 }
 0x21f   :  { %186 = vsyncpa [#allocation4], 1 }

</bundles_post_ra>
